<compile_context>
chip_gen: v6e
topology: v6e:2x2x1
jax: 0.10.0
libtpu: 0.0.40
codegen_flags: <defaults>
</compile_context>

<pallas_src>
import functools

import jax
import jax.numpy as jnp
from jax.experimental import pallas as pl
from jax.experimental.pallas import tpu as pltpu

DROPOUT_P = 0.2


def _ffn_kernel(*refs, training):
    if training:
        x_ref, w1_ref, b1_ref, w2_ref, b2_ref, mask_ref, o_ref = refs
    else:
        x_ref, w1_ref, b1_ref, w2_ref, b2_ref, o_ref = refs

    # Linear 1 (bf16 operands, f32 accumulation on the MXU) + bias + ReLU.
    h = jnp.dot(x_ref[...], w1_ref[...], preferred_element_type=jnp.float32)
    h = jnp.maximum(h + b1_ref[...], 0.0)

    # Linear 2 (cast the activation back to bf16 for the MXU).
    y = jnp.dot(h.astype(jnp.bfloat16), w2_ref[...],
                preferred_element_type=jnp.float32)
    y = y + b2_ref[...]

    if training:
        # Inverted dropout: the 1/(1-p) scale is already folded into w2/b2 by
        # the wrapper, so only the {0,1} keep mask remains (one VPU multiply).
        y = y * mask_ref[...]

    o_ref[...] = y.astype(o_ref.dtype)


def _pick_row_tile(m):
    # Largest row tile <= 256 that divides M (TM ~256 feeds the MXU well and
    # keeps the f32 intermediate (TM, 4C) comfortably inside VMEM).
    for tm in (256, 128, 64, 32, 16, 8):
        if m % tm == 0:
            return tm
    raise ValueError("row count must be a multiple of 8 for this tiling")


def feedforward(x, w1, b1, w2, b2, *, drop_mask=None, p_drop=DROPOUT_P):
    """FeedForward forward pass.

    x:  (..., C) float32
    w1: (C, H) float32   b1: (H,) float32     (H = 4*C)
    w2: (H, C) float32   b2: (C,) float32
    drop_mask: optional (..., C) {0,1} keep-mask -> training-mode dropout.
               None -> eval mode (dropout is the identity).
    """
    orig_shape = x.shape
    C = orig_shape[-1]
    H = w1.shape[1]
    x2d = x.reshape(-1, C)
    M = x2d.shape[0]
    assert M % 8 == 0, "row count must be a multiple of 8 for this tiling"

    training = drop_mask is not None

    # bf16 matmul operands (halves HBM traffic and resident weight footprint,
    # doubles MXU throughput). Biases stay f32.
    x_bf16 = x2d.astype(jnp.bfloat16)
    w1_bf16 = w1.astype(jnp.bfloat16)
    if training:
        scale = 1.0 / (1.0 - p_drop)
        w2_eff = (w2 * scale).astype(jnp.bfloat16)
        b2_eff = (b2 * scale).astype(jnp.float32)
    else:
        w2_eff = w2.astype(jnp.bfloat16)
        b2_eff = b2.astype(jnp.float32)
    b1_f32 = b1.astype(jnp.float32).reshape(1, H)
    b2_f32 = b2_eff.reshape(1, C)

    TM = _pick_row_tile(M)
    grid = (M // TM,)

    # x / mask / out walk the row tiles; weights & biases are grid-invariant
    # (constant index map) so they are loaded once and stay resident in VMEM.
    in_specs = [
        pl.BlockSpec((TM, C), lambda i: (i, 0)),   # x tile
        pl.BlockSpec((C, H), lambda i: (0, 0)),    # w1 (resident)
        pl.BlockSpec((1, H), lambda i: (0, 0)),    # b1 (resident)
        pl.BlockSpec((H, C), lambda i: (0, 0)),    # w2 (resident)
        pl.BlockSpec((1, C), lambda i: (0, 0)),    # b2 (resident)
    ]
    args = [x_bf16, w1_bf16, b1_f32, w2_eff, b2_f32]

    bytes_accessed = (M * C * 2 + C * H * 2 + H * C * 2 + H * 4 + C * 4
                      + M * C * 4)
    if training:
        mask2d = drop_mask.reshape(-1, C).astype(jnp.float32)
        in_specs.append(pl.BlockSpec((TM, C), lambda i: (i, 0)))  # keep mask
        args.append(mask2d)
        bytes_accessed += M * C * 4

    kernel = functools.partial(_ffn_kernel, training=training)

    out2d = pl.pallas_call(
        kernel,
        out_shape=jax.ShapeDtypeStruct((M, C), x.dtype),
        grid=grid,
        in_specs=in_specs,
        out_specs=pl.BlockSpec((TM, C), lambda i: (i, 0)),
        compiler_params=pltpu.CompilerParams(
            # Row tiles are independent -> shard across TCs on v7x megacore.
            dimension_semantics=("parallel",),
            # Explicit budget (fits v7x's 64 MiB physical VMEM with headroom).
            vmem_limit_bytes=64 * 1024 * 1024,
        ),
        cost_estimate=pl.CostEstimate(
            flops=4 * M * C * H,          # two matmuls, 2 flops per MAC
            transcendentals=0,
            bytes_accessed=bytes_accessed,
        ),
    )(*args)

    return out2d.reshape(orig_shape)


def init_feedforward_params(key, n_embed):
    """Deterministic init mimicking torch.nn.Linear (uniform +-1/sqrt(fan_in)),
    stored pre-transposed as (in_features, out_features)."""
    hidden = 4 * n_embed
    k1, k2, k3, k4 = jax.random.split(key, 4)
    bound1 = 1.0 / (n_embed ** 0.5)
    bound2 = 1.0 / (hidden ** 0.5)
    w1 = jax.random.uniform(k1, (n_embed, hidden), jnp.float32, -bound1, bound1)
    b1 = jax.random.uniform(k2, (hidden,), jnp.float32, -bound1, bound1)
    w2 = jax.random.uniform(k3, (hidden, n_embed), jnp.float32, -bound2, bound2)
    b2 = jax.random.uniform(k4, (n_embed,), jnp.float32, -bound2, bound2)
    return w1, b1, w2, b2


if __name__ == "__main__":
    # Small shapes consistent with the module: batch=2, seq=8, n_embed=384
    # (hidden = 4 * 384 = 1536; C=384 keeps stores lane-dense).
    B, T, C = 2, 8, 384
    H = 4 * C

    key = jax.random.PRNGKey(0)
    kx, kp, kd = jax.random.split(key, 3)

    x = jax.random.normal(kx, (B, T, C), dtype=jnp.float32)
    w1, b1, w2, b2 = init_feedforward_params(kp, C)

    # Training-mode dropout keep-mask (keep prob = 1 - p), same Bernoulli
    # semantics as nn.Dropout(0.2).train().
    keep = jax.random.bernoulli(kd, 1.0 - DROPOUT_P, (B, T, C)).astype(jnp.float32)

    # Training-mode forward (dropout active).
    y_train = jax.block_until_ready(feedforward(x, w1, b1, w2, b2, drop_mask=keep))
    # Eval-mode forward (dropout = identity).
    y_eval = jax.block_until_ready(feedforward(x, w1, b1, w2, b2))

    # Pure-JAX references using the same bf16 operand precision as the kernel.
    x2d = x.reshape(-1, C)
    xb = x2d.astype(jnp.bfloat16)
    w1b = w1.astype(jnp.bfloat16)
    w2b = w2.astype(jnp.bfloat16)
    h_ref = jnp.maximum(jnp.dot(xb, w1b, preferred_element_type=jnp.float32) + b1, 0.0)
    ref_eval = jnp.dot(h_ref.astype(jnp.bfloat16), w2b,
                       preferred_element_type=jnp.float32) + b2

    scale = 1.0 / (1.0 - DROPOUT_P)
    w2sb = (w2 * scale).astype(jnp.bfloat16)
    ref_train = (jnp.dot(h_ref.astype(jnp.bfloat16), w2sb,
                         preferred_element_type=jnp.float32) + b2 * scale)
    ref_train = ref_train * keep.reshape(-1, C)

    assert y_eval.shape == x.shape and y_train.shape == x.shape
    assert jnp.allclose(y_eval.reshape(-1, C), ref_eval, atol=5e-3, rtol=5e-3)
    assert jnp.allclose(y_train.reshape(-1, C), ref_train, atol=5e-3, rtol=5e-3)
    # Dropped positions must be exactly zero.
    assert jnp.all(jnp.where(keep.reshape(-1, C) == 0.0,
                             y_train.reshape(-1, C) == 0.0, True))

    print("KERNEL_OK")
</pallas_src>

<mosaic_0001>
module attributes {stable_mosaic.version = 11 : i64} {
  func.func @_ffn_kernel(%arg0: i32, %arg1: memref<16x384xbf16, #tpu.memory_space<vmem>>, %arg2: memref<384x1536xbf16, #tpu.memory_space<vmem>>, %arg3: memref<1x1536xf32, #tpu.memory_space<vmem>>, %arg4: memref<1536x384xbf16, #tpu.memory_space<vmem>>, %arg5: memref<1x384xf32, #tpu.memory_space<vmem>>, %arg6: memref<16x384xf32, #tpu.memory_space<vmem>>, %arg7: memref<16x384xf32, #tpu.memory_space<vmem>>) attributes {dimension_semantics = [#tpu.dimension_semantics<parallel>], iteration_bounds = array<i64: 1>, scalar_prefetch = 0 : i64, scratch_operands = 0 : i64, tpu.core_type = #tpu.core_type<tc>, window_params = [{transform_indices = @transform_0, window_bounds = array<i64: 16, 384>}, {pipeline_mode = #tpu.pipeline_mode<synchronous>, transform_indices = @transform_1, window_bounds = array<i64: 384, 1536>}, {pipeline_mode = #tpu.pipeline_mode<synchronous>, transform_indices = @transform_2, window_bounds = array<i64: 1, 1536>}, {pipeline_mode = #tpu.pipeline_mode<synchronous>, transform_indices = @transform_3, window_bounds = array<i64: 1536, 384>}, {pipeline_mode = #tpu.pipeline_mode<synchronous>, transform_indices = @transform_4, window_bounds = array<i64: 1, 384>}, {transform_indices = @transform_5, window_bounds = array<i64: 16, 384>}, {transform_indices = @transform_6, window_bounds = array<i64: 16, 384>}]} {
    %c0 = arith.constant 0 : index
    %c0_0 = arith.constant 0 : index
    %0 = vector.load %arg1[%c0, %c0_0] : memref<16x384xbf16, #tpu.memory_space<vmem>>, vector<16x384xbf16>
    %c0_1 = arith.constant 0 : index
    %c0_2 = arith.constant 0 : index
    %1 = vector.load %arg2[%c0_1, %c0_2] : memref<384x1536xbf16, #tpu.memory_space<vmem>>, vector<384x1536xbf16>
    %cst = arith.constant dense<0.000000e+00> : vector<16x1536xf32>
    %2 = tpu.matmul %0, %1, %cst {dimension_numbers = #tpu.dot_dimension_numbers<[1], [0], [0], [1], [0, 0, 1, 1], [], []>} : vector<16x384xbf16>, vector<384x1536xbf16>, vector<16x1536xf32> -> vector<16x1536xf32>
    %c0_3 = arith.constant 0 : index
    %c0_4 = arith.constant 0 : index
    %3 = vector.load %arg3[%c0_3, %c0_4] : memref<1x1536xf32, #tpu.memory_space<vmem>>, vector<1x1536xf32>
    %4 = vector.broadcast %3 : vector<1x1536xf32> to vector<16x1536xf32>
    %5 = arith.addf %2, %4 : vector<16x1536xf32>
    %cst_5 = arith.constant 0.000000e+00 : f32
    %6 = vector.broadcast %cst_5 : f32 to vector<16x1536xf32>
    %7 = arith.maximumf %5, %6 : vector<16x1536xf32>
    %8 = arith.truncf %7 : vector<16x1536xf32> to vector<16x1536xbf16>
    %c0_6 = arith.constant 0 : index
    %c0_7 = arith.constant 0 : index
    %9 = vector.load %arg4[%c0_6, %c0_7] : memref<1536x384xbf16, #tpu.memory_space<vmem>>, vector<1536x384xbf16>
    %cst_8 = arith.constant dense<0.000000e+00> : vector<16x384xf32>
    %10 = tpu.matmul %8, %9, %cst_8 {dimension_numbers = #tpu.dot_dimension_numbers<[1], [0], [0], [1], [0, 0, 1, 1], [], []>} : vector<16x1536xbf16>, vector<1536x384xbf16>, vector<16x384xf32> -> vector<16x384xf32>
    %c0_9 = arith.constant 0 : index
    %c0_10 = arith.constant 0 : index
    %11 = vector.load %arg5[%c0_9, %c0_10] : memref<1x384xf32, #tpu.memory_space<vmem>>, vector<1x384xf32>
    %12 = vector.broadcast %11 : vector<1x384xf32> to vector<16x384xf32>
    %13 = arith.addf %10, %12 : vector<16x384xf32>
    %c0_11 = arith.constant 0 : index
    %c0_12 = arith.constant 0 : index
    %14 = vector.load %arg6[%c0_11, %c0_12] : memref<16x384xf32, #tpu.memory_space<vmem>>, vector<16x384xf32>
    %15 = arith.mulf %13, %14 : vector<16x384xf32>
    %c0_13 = arith.constant 0 : index
    %c0_14 = arith.constant 0 : index
    %16 = vector.load %arg7[%c0_13, %c0_14] : memref<16x384xf32, #tpu.memory_space<vmem>>, vector<16x384xf32>
    tpu.vector_store %arg7[%c0_13, %c0_14], %15 {strides = array<i32>} : memref<16x384xf32, #tpu.memory_space<vmem>>, vector<16x384xf32>,
    return
  }
  func.func @transform_0(%arg0: i32) -> (i32, i32) {
    %c0_i32 = arith.constant 0 : i32
    %c0_i32_0 = arith.constant 0 : i32
    return %arg0, %c0_i32 : i32, i32
  }
  func.func @transform_1(%arg0: i32) -> (i32, i32) {
    %c0_i32 = arith.constant 0 : i32
    %c0_i32_0 = arith.constant 0 : i32
    %c0_i32_1 = arith.constant 0 : i32
    return %c0_i32, %c0_i32_0 : i32, i32
  }
  func.func @transform_2(%arg0: i32) -> (i32, i32) {
    %c0_i32 = arith.constant 0 : i32
    %c0_i32_0 = arith.constant 0 : i32
    %c0_i32_1 = arith.constant 0 : i32
    return %c0_i32, %c0_i32_0 : i32, i32
  }
  func.func @transform_3(%arg0: i32) -> (i32, i32) {
    %c0_i32 = arith.constant 0 : i32
    %c0_i32_0 = arith.constant 0 : i32
    %c0_i32_1 = arith.constant 0 : i32
    return %c0_i32, %c0_i32_0 : i32, i32
  }
  func.func @transform_4(%arg0: i32) -> (i32, i32) {
    %c0_i32 = arith.constant 0 : i32
    %c0_i32_0 = arith.constant 0 : i32
    %c0_i32_1 = arith.constant 0 : i32
    return %c0_i32, %c0_i32_0 : i32, i32
  }
  func.func @transform_5(%arg0: i32) -> (i32, i32) {
    %c0_i32 = arith.constant 0 : i32
    %c0_i32_0 = arith.constant 0 : i32
    return %arg0, %c0_i32 : i32, i32
  }
  func.func @transform_6(%arg0: i32) -> (i32, i32) {
    %c0_i32 = arith.constant 0 : i32
    %c0_i32_0 = arith.constant 0 : i32
    return %arg0, %c0_i32 : i32, i32
  }
}

</mosaic_0001>

<bundles_post_ra>
// kernel: tpu_custom_call.1
= control target key start
LH: loop header
LB: loop body
LE: loop exit
PB: predicated region body
PF: predicated region fallthrough
CT: control target
= control target key end

     0   :  { %11 = vsyncpa [#allocation3], 0  ;;  %s6888_s0 = inlined_call_operand.hbm [shape: bf16[16,384], index: 0, kind: input, shape index: {}]   ;;  %s6889_s1 = inlined_call_operand.hbm [shape: bf16[384,1536], index: 1, kind: input, shape index: {}]   ;;  %s6890_s2 = inlined_call_operand.hbm [shape: f32[1,1536], index: 2, kind: input, shape index: {}]   ;;  %s6891_s3 = inlined_call_operand.hbm [shape: bf16[1536,384], index: 3, kind: input, shape index: {}]   ;;  %s6892_s4 = inlined_call_operand.hbm [shape: f32[1,384], index: 4, kind: input, shape index: {}]   ;;  %s6893_s5 = inlined_call_operand.hbm [shape: f32[16,384], index: 5, kind: input, shape index: {}]   ;;  %s6894_s6 = inlined_call_operand.hbm [shape: f32[16,384], index: 6, kind: output, shape index: {}]  }
   0x1   :  { %12 = vsyncpa [#allocation6], 0 }
   0x2   :  { %13 = vsyncpa [#allocation9], 0 }
   0x3   :  { %14 = vsyncpa [#allocation12], 0 }
   0x4   :  { %15 = vsyncpa [#allocation4], 0  ;;  %s6645_s21 = smov [#allocation5]  }
   0x5   :  { %s33_s22 = sshll.u32 %s6645_s21, 4  ;;  %s34_s22 = int_to_ptr.vmem [resolvable:$true] %s33_s22 }
   0x6   :  { %s6503_s23 = scalar_lea.vmem %s34_s22, 36864  ;;  %p6508_p1 = scmp.lt.s32.totalorder %s34_s22, %s34_s22 }
   0x7   :  { %p6504_p0 = scmp.ne.s32.totalorder %s34_s22, %s6503_s23  ;;  %p6509_p2 = scmp.lt.s32.totalorder %s6503_s23, %s6503_s23 }
   0x9   :  { %p6510_p3 = por %p6509_p2, %p6508_p1 }
   0xb   :  { %p6511_p4 = pnand %p6510_p3, %p6504_p0 }
   0xd   :  { %6514 = shalt.err (!%p6511_p4)
}
   0xe   :  { %s6646_s24 = smov 768   ;;  %s6647_s25 = smov 48  }
   0xf   :  { %39 = dma.hbm_to_vmem [thread:$0]  %s6889_s1, 36864, %s34_s22, [#allocation6], %s6646_s24, %s6646_s24, %s6647_s25  }
  0x10   :  { %s6648_s28 = smov [#allocation8]   ;;  %s6649_s30 = smov [#allocation2]  }
  0x11   :  { %s55_s29 = sshll.u32 %s6648_s28, 4  ;;  %s21_s7 = sshll.u32 %s6649_s30, 4  ;;  %s56_s29 = int_to_ptr.vmem [resolvable:$true] %s55_s29  ;;  %s22_s7 = int_to_ptr.vmem [resolvable:$true] %s21_s7 }
  0x12   :  { %s6523_s8 = scalar_lea.vmem %s56_s29, 36864  ;;  %p6528_p6 = scmp.lt.s32.totalorder %s56_s29, %s56_s29 }
  0x13   :  { %p6524_p5 = scmp.ne.s32.totalorder %s56_s29, %s6523_s8  ;;  %p6529_p7 = scmp.lt.s32.totalorder %s6523_s8, %s6523_s8 }
  0x15   :  { %p6530_p8 = por %p6529_p7, %p6528_p6 }
  0x17   :  { %p6531_p9 = pnand %p6530_p8, %p6524_p5 }
  0x19   :  { %6534 = shalt.err (!%p6531_p9)
}
  0x1a   :  { %s6650_s9 = smov 192   ;;  %s6651_s10 = smov 12  }
  0x1b   :  { %61 = dma.hbm_to_vmem [thread:$0]  %s6891_s3, 36864, %s56_s29, [#allocation9], %s6650_s9, %s6650_s9, %s6651_s10  }
  0x1c   :  { %s6543_s1 = scalar_lea.vmem %s22_s7, 384  ;;  %p6548_p11 = scmp.lt.s32.totalorder %s22_s7, %s22_s7 }
  0x1d   :  { %p6544_p10 = scmp.ne.s32.totalorder %s22_s7, %s6543_s1  ;;  %p6549_p12 = scmp.lt.s32.totalorder %s6543_s1, %s6543_s1 }
  0x1f   :  { %p6550_p13 = por %p6549_p12, %p6548_p11 }
  0x21   :  { %p6551_p0 = pnand %p6550_p13, %p6544_p10 }
  0x23   :  { %6554 = shalt.err (!%p6551_p0)
}
  0x24   :  { %27 = dma.hbm_to_vmem [thread:$0]  %s6888_s0, 384, %s22_s7, [#allocation3], %s6650_s9, %s6650_s9, %s6651_s10  }
  0x25   :  { %s6652_s15 = smov [#allocation7]   ;;  %s6653_s17 = smov [#allocation10]  }
  0x26   :  { %s46_s16 = sshll.u32 %s6652_s15, 4  ;;  %s68_s18 = sshll.u32 %s6653_s17, 4  ;;  %s47_s16 = int_to_ptr.vmem [resolvable:$true] %s46_s16  ;;  %s69_s18 = int_to_ptr.vmem [resolvable:$true] %s68_s18 }
  0x27   :  { %s6563_s19 = scalar_lea.vmem %s47_s16, 192  ;;  %p6568_p2 = scmp.lt.s32.totalorder %s47_s16, %s47_s16 }
  0x28   :  { %p6564_p1 = scmp.ne.s32.totalorder %s47_s16, %s6563_s19  ;;  %p6569_p3 = scmp.lt.s32.totalorder %s6563_s19, %s6563_s19 }
  0x2a   :  { %p6570_p4 = por %p6569_p3, %p6568_p2 }
  0x2c   :  { %p6571_p5 = pnand %p6570_p4, %p6564_p1 }
  0x2e   :  { %6574 = shalt.err (!%p6571_p5)
}
  0x2f   :  { %49 = dma.hbm_to_vmem [thread:$0]  %s6890_s2, 192, %s47_s16, [#allocation6]  }
  0x30   :  { %s6583_s21 = scalar_lea.vmem %s69_s18, 48  ;;  %s6587_s0 = scalar_lea.vmem %s69_s18, 64 }
  0x31   :  { %p6584_p6 = scmp.ne.s32.totalorder %s69_s18, %s6583_s21  ;;  %p6588_p7 = scmp.lt.s32.totalorder %s69_s18, %s69_s18 }
  0x32   :  { %p6589_p8 = scmp.lt.s32.totalorder %s6587_s0, %s6583_s21 }
  0x34   :  { %p6590_p9 = por %p6589_p8, %p6588_p7 }
  0x36   :  { %p6591_p10 = pnand %p6590_p9, %p6584_p6 }
  0x38   :  { %6594 = shalt.err (!%p6591_p10)
}
  0x39   :  { %71 = dma.hbm_to_vmem [thread:$0]  %s6892_s4, 48, %s69_s18, [#allocation9]  }
  0x3a   :  { %s6654_s24 = smov [#allocation11]  }
  0x3b   :  { %s77_s25 = sshll.u32 %s6654_s24, 4  ;;  %s78_s25 = int_to_ptr.vmem [resolvable:$true] %s77_s25 }
  0x3c   :  { %s6603_s26 = scalar_lea.vmem %s78_s25, 768  ;;  %p6608_p12 = scmp.lt.s32.totalorder %s78_s25, %s78_s25 }
  0x3d   :  { %p6604_p11 = scmp.ne.s32.totalorder %s78_s25, %s6603_s26  ;;  %p6609_p13 = scmp.lt.s32.totalorder %s6603_s26, %s6603_s26 }
  0x3f   :  { %p6610_p0 = por %p6609_p13, %p6608_p12 }
  0x41   :  { %p6611_p1 = pnand %p6610_p0, %p6604_p11 }
  0x43   :  { %6614 = shalt.err (!%p6611_p1)
}
  0x44   :  { %s6655_s2 = smov 384   ;;  %s6656_s27 = smov 24  }
  0x45   :  { %83 = dma.hbm_to_vmem [thread:$0]  %s6893_s5, 768, %s78_s25, [#allocation12], %s6655_s2, %s6655_s2, %s6656_s27  }
  0x46   :  { %6635 = dma.done.wait [#allocation3], 384  }
  0x47   :  { %6636 = vsyncadd [#allocation3], 4294966912 }
  0x48   :  { %6637 = dma.done.wait [#allocation6], 37056  }
  0x49   :  { %6638 = vsyncadd [#allocation6], 4294930240 }
  0x4a   :  { %6639 = dma.done.wait [#allocation9], 36912  }
  0x4b   :  { %6640 = vsyncadd [#allocation9], 4294930384 }
  0x4c   :  { %6641 = dma.done.wait [#allocation12], 768  }
  0x4d   :  { %6642 = vsyncadd [#allocation12], 4294966528  ;;  %v6657_v0 = vmov 0   ;;  %v5671_v1 = vld [vmem:[#allocation5 + $0x2a4] ss:$48 sps:$4 sm:$0xff]   ;;  %s6658_s4 = smov [#allocation13]  }
  0x4e   :  { %1990 = vmatprep.mubr.bf16.mxu1 %v6657_v0  ;;  %v5673_v2 = vld [vmem:[#allocation5 + $0x8a4] ss:$48 sps:$4 sm:$0xff]   ;;  %1915 = vmatprep.subr.bf16.mxu0 %v5671_v1  ;;  %v5675_v3 = vld [vmem:[#allocation5 + $0x2a0] ss:$48 sps:$4 sm:$0xff]   ;;  %v5724_v34 = vld [vmem:[#allocation5 + $0x2ac] ss:$48 sps:$4 sm:$0xff]  }
  0x4f   :  { %v5676_v4 = vld [vmem:[#allocation5 + $0x8a0] ss:$48 sps:$4 sm:$0xff]   ;;  %1958 = vmatprep.subr.bf16.mxu1 %v5673_v2  ;;  %v5677_v5 = vld [vmem:[#allocation5 + $0x244] ss:$48 sps:$4 sm:$0xff]   ;;  %1916 = vmatpush1.bf16.msra.mxu0 %v5675_v3  ;;  %v5722_v36 = vld [vmem:[#allocation5 + $0x2a8] ss:$48 sps:$4 sm:$0xff]  }
  0x50   :  { %1959 = vmatpush1.bf16.msra.mxu1 %v5676_v4  ;;  %v5679_v6 = vld [vmem:[#allocation5 + $0x844] ss:$48 sps:$4 sm:$0xff]   ;;  %v5681_v7 = vld [vmem:[#allocation5 + $0x240] ss:$48 sps:$4 sm:$0xff]   ;;  %1917 = vmatprep.subr.bf16.mxu0 %v5677_v5  ;;  %v5730_v39 = vld [vmem:[#allocation5 + $0x24c] ss:$48 sps:$4 sm:$0xff]  }
  0x51   :  { %v5682_v8 = vld [vmem:[#allocation5 + $0x840] ss:$48 sps:$4 sm:$0xff]   ;;  %1960 = vmatprep.subr.bf16.mxu1 %v5679_v6  ;;  %v5683_v9 = vld [vmem:[#allocation5 + $0x1e4] ss:$48 sps:$4 sm:$0xff]   ;;  %v5728_v40 = vld [vmem:[#allocation5 + $0x248] ss:$48 sps:$4 sm:$0xff]  }
  0x52   :  { %v5685_v10 = vld [vmem:[#allocation5 + $0x7e4] ss:$48 sps:$4 sm:$0xff]   ;;  %v5687_v11 = vld [vmem:[#allocation5 + $0x1e0] ss:$48 sps:$4 sm:$0xff]   ;;  %v5736_v43 = vld [vmem:[#allocation5 + $0x1ec] ss:$48 sps:$4 sm:$0xff]  }
  0x53   :  { %v5688_v12 = vld [vmem:[#allocation5 + $0x7e0] ss:$48 sps:$4 sm:$0xff]   ;;  %1918 = vmatpush1.bf16.msra.mxu0 %v5681_v7  ;;  %v5689_v13 = vld [vmem:[#allocation5 + $0x184] ss:$48 sps:$4 sm:$0xff]   ;;  %v5734_v44 = vld [vmem:[#allocation5 + $0x1e8] ss:$48 sps:$4 sm:$0xff]  }
  0x54   :  { %1961 = vmatpush1.bf16.msra.mxu1 %v5682_v8  ;;  %1919 = vmatprep.subr.bf16.mxu0 %v5683_v9  ;;  %v5691_v14 = vld [vmem:[#allocation5 + $0x784] ss:$48 sps:$4 sm:$0xff]   ;;  %v5693_v15 = vld [vmem:[#allocation5 + $0x180] ss:$48 sps:$4 sm:$0xff]   ;;  %v5742_v47 = vld [vmem:[#allocation5 + $0x18c] ss:$48 sps:$4 sm:$0xff]  }
  0x55   :  { %1962 = vmatprep.subr.bf16.mxu1 %v5685_v10  ;;  %v5694_v16 = vld [vmem:[#allocation5 + $0x780] ss:$48 sps:$4 sm:$0xff]   ;;  %v5695_v17 = vld [vmem:[#allocation5 + $0x124] ss:$48 sps:$4 sm:$0xff]   ;;  %v5740_v48 = vld [vmem:[#allocation5 + $0x188] ss:$48 sps:$4 sm:$0xff]  }
  0x56   :  { %v5697_v18 = vld [vmem:[#allocation5 + $0x724] ss:$48 sps:$4 sm:$0xff]   ;;  %v5699_v19 = vld [vmem:[#allocation5 + $0x120] ss:$48 sps:$4 sm:$0xff]   ;;  %v6719_v51 = vld [vmem:[#allocation2 + $0x4] ss:$12 sps:$4 sm:$0xff]  }
  0x57   :  { %1920 = vmatpush1.bf16.msra.mxu0 %v5687_v11  ;;  %v5700_v20 = vld [vmem:[#allocation5 + $0x720] ss:$48 sps:$4 sm:$0xff]   ;;  %v5701_v21 = vld [vmem:[#allocation5 + $0xc4] ss:$48 sps:$4 sm:$0xff]   ;;  %v5748_v52 = vld [vmem:[#allocation5 + $0x12c] ss:$48 sps:$4 sm:$0xff]   ;;  %1947 = vmatprep.mubr.bf16.mxu0 %v6719_v51 }
  0x58   :  { %1963 = vmatpush1.bf16.msra.mxu1 %v5688_v12  ;;  %1921 = vmatprep.subr.bf16.mxu0 %v5689_v13  ;;  %v5703_v22 = vld [vmem:[#allocation5 + $0x6c4] ss:$48 sps:$4 sm:$0xff]   ;;  %v5705_v23 = vld [vmem:[#allocation5 + $0xc0] ss:$48 sps:$4 sm:$0xff]   ;;  %v5746_v53 = vld [vmem:[#allocation5 + $0x128] ss:$48 sps:$4 sm:$0xff]  }
  0x59   :  { %1964 = vmatprep.subr.bf16.mxu1 %v5691_v14  ;;  %v5706_v24 = vld [vmem:[#allocation5 + $0x6c0] ss:$48 sps:$4 sm:$0xff]   ;;  %v5707_v25 = vld [vmem:[#allocation5 + $0x64] ss:$48 sps:$4 sm:$0xff]   ;;  %v5754_v56 = vld [vmem:[#allocation5 + $0xcc] ss:$48 sps:$4 sm:$0xff]  }
  0x5a   :  { %v5709_v26 = vld [vmem:[#allocation5 + $0x664] ss:$48 sps:$4 sm:$0xff]   ;;  %v5711_v27 = vld [vmem:[#allocation5 + $0x60] ss:$48 sps:$4 sm:$0xff]   ;;  %v5752_v57 = vld [vmem:[#allocation5 + $0xc8] ss:$48 sps:$4 sm:$0xff]  }
  0x5b   :  { %1922 = vmatpush1.bf16.msra.mxu0 %v5693_v15  ;;  %v5712_v28 = vld [vmem:[#allocation5 + $0x660] ss:$48 sps:$4 sm:$0xff]   ;;  %v5713_v29 = vld [vmem:[#allocation5 + $0x4] ss:$48 sps:$4 sm:$0xff]   ;;  %v5760_v60 = vld [vmem:[#allocation5 + $0x6c] ss:$48 sps:$4 sm:$0xff]  }
  0x5c   :  { %1965 = vmatpush1.bf16.msra.mxu1 %v5694_v16  ;;  %1923 = vmatprep.subr.bf16.mxu0 %v5695_v17  ;;  %v5715_v30 = vld [vmem:[#allocation5 + $0x604] ss:$48 sps:$4 sm:$0xff]   ;;  %v5717_v31 = vld [vmem:[#allocation5] ss:$48 sps:$4 sm:$0xff]   ;;  %v5758_v61 = vld [vmem:[#allocation5 + $0x68] ss:$48 sps:$4 sm:$0xff]  }
  0x5d   :  { %1966 = vmatprep.subr.bf16.mxu1 %v5697_v18  ;;  %v5718_v32 = vld [vmem:[#allocation5 + $0x600] ss:$48 sps:$4 sm:$0xff]   ;;  %v5719_v33 = vld [vmem:[#allocation5 + $0x5a4] ss:$48 sps:$4 sm:$0xff]   ;;  %v5766_v1 = vld [vmem:[#allocation5 + $0xc] ss:$48 sps:$4 sm:$0xff]  }
  0x5e   :  { %v6716_v35 = vld [vmem:[#allocation2 + $0x8] ss:$12 sps:$4 sm:$0xff]   ;;  %v5726_v38 = vld [vmem:[#allocation5 + $0x544] ss:$48 sps:$4 sm:$0xff]   ;;  %v5764_v2 = vld [vmem:[#allocation5 + $0x8] ss:$48 sps:$4 sm:$0xff]  }
  0x5f   :  { %1924 = vmatpush1.bf16.msra.mxu0 %v5699_v19  ;;  %v5725_v37 = vld [vmem:[#allocation5 + $0x5a0] ss:$48 sps:$4 sm:$0xff]   ;;  %v5732_v42 = vld [vmem:[#allocation5 + $0x4e4] ss:$48 sps:$4 sm:$0xff]   ;;  %v5773_v4 = vld [vmem:[#allocation5 + $0x5ac] ss:$48 sps:$4 sm:$0xff]  }
  0x60   :  { %1967 = vmatpush1.bf16.msra.mxu1 %v5700_v20  ;;  %1925 = vmatprep.subr.bf16.mxu0 %v5701_v21  ;;  %v5731_v41 = vld [vmem:[#allocation5 + $0x540] ss:$48 sps:$4 sm:$0xff]   ;;  %v5738_v46 = vld [vmem:[#allocation5 + $0x484] ss:$48 sps:$4 sm:$0xff]   ;;  %v5776_v5 = vld [vmem:[#allocation5 + $0x8ac] ss:$48 sps:$4 sm:$0xff]  }
  0x61   :  { %1968 = vmatprep.subr.bf16.mxu1 %v5703_v22  ;;  %v5737_v45 = vld [vmem:[#allocation5 + $0x4e0] ss:$48 sps:$4 sm:$0xff]   ;;  %v5744_v50 = vld [vmem:[#allocation5 + $0x424] ss:$48 sps:$4 sm:$0xff]   ;;  %v5771_v7 = vld [vmem:[#allocation5 + $0x5a8] ss:$48 sps:$4 sm:$0xff]  }
  0x62   :  { %v5743_v49 = vld [vmem:[#allocation5 + $0x480] ss:$48 sps:$4 sm:$0xff]   ;;  %v5750_v55 = vld [vmem:[#allocation5 + $0x3c4] ss:$48 sps:$4 sm:$0xff]   ;;  %v5774_v8 = vld [vmem:[#allocation5 + $0x8a8] ss:$48 sps:$4 sm:$0xff]  }
  0x63   :  { %1926 = vmatpush1.bf16.msra.mxu0 %v5705_v23  ;;  %v5749_v54 = vld [vmem:[#allocation5 + $0x420] ss:$48 sps:$4 sm:$0xff]   ;;  %v5756_v59 = vld [vmem:[#allocation5 + $0x364] ss:$48 sps:$4 sm:$0xff]   ;;  %v5779_v9 = vld [vmem:[#allocation5 + $0x54c] ss:$48 sps:$4 sm:$0xff]  }
  0x64   :  { %1969 = vmatpush1.bf16.msra.mxu1 %v5706_v24  ;;  %1927 = vmatprep.subr.bf16.mxu0 %v5707_v25  ;;  %v5755_v58 = vld [vmem:[#allocation5 + $0x3c0] ss:$48 sps:$4 sm:$0xff]   ;;  %v5762_v63 = vld [vmem:[#allocation5 + $0x304] ss:$48 sps:$4 sm:$0xff]   ;;  %v5782_v10 = vld [vmem:[#allocation5 + $0x84c] ss:$48 sps:$4 sm:$0xff]  }
  0x65   :  { %1970 = vmatprep.subr.bf16.mxu1 %v5709_v26  ;;  %v5761_v62 = vld [vmem:[#allocation5 + $0x360] ss:$48 sps:$4 sm:$0xff]   ;;  %v6723_v6 = vld [vmem:[#allocation2] ss:$12 sps:$4 sm:$0xff]   ;;  %v5785_v13 = vld [vmem:[#allocation5 + $0x4ec] ss:$48 sps:$4 sm:$0xff]  }
  0x66   :  { %v5767_v3 = vld [vmem:[#allocation5 + $0x300] ss:$48 sps:$4 sm:$0xff]   ;;  %v5777_v11 = vld [vmem:[#allocation5 + $0x548] ss:$48 sps:$4 sm:$0xff]   ;;  %v5788_v14 = vld [vmem:[#allocation5 + $0x7ec] ss:$48 sps:$4 sm:$0xff]  }
  0x67   :  { %1928 = vmatpush1.bf16.msra.mxu0 %v5711_v27  ;;  %v5780_v12 = vld [vmem:[#allocation5 + $0x848] ss:$48 sps:$4 sm:$0xff]   ;;  %v5791_v17 = vld [vmem:[#allocation5 + $0x48c] ss:$48 sps:$4 sm:$0xff]   ;;  %s4931_s5 = sshll.u32 %s6658_s4, 4  ;;  %s4932_s5 = int_to_ptr.vmem [resolvable:$true] %s4931_s5 }
  0x68   :  { %1971 = vmatpush1.bf16.msra.mxu1 %v5712_v28  ;;  %1929 = vmatprep.subr.bf16.mxu0 %v5713_v29  ;;  %v5783_v15 = vld [vmem:[#allocation5 + $0x4e8] ss:$48 sps:$4 sm:$0xff]   ;;  %v5794_v18 = vld [vmem:[#allocation5 + $0x78c] ss:$48 sps:$4 sm:$0xff]   ;;  %s6615_s30 = scalar_lea.vmem %s4932_s5, 768  ;;  %p6620_p3 = scmp.lt.s32.totalorder %s4932_s5, %s4932_s5 }
  0x69   :  { %1972 = vmatprep.subr.bf16.mxu1 %v5715_v30  ;;  %v5786_v16 = vld [vmem:[#allocation5 + $0x7e8] ss:$48 sps:$4 sm:$0xff]   ;;  %v5797_v21 = vld [vmem:[#allocation5 + $0x42c] ss:$48 sps:$4 sm:$0xff]   ;;  %p6616_p2 = scmp.ne.s32.totalorder %s4932_s5, %s6615_s30  ;;  %p6621_p4 = scmp.lt.s32.totalorder %s6615_s30, %s6615_s30 }
  0x6a   :  { %v5789_v19 = vld [vmem:[#allocation5 + $0x488] ss:$48 sps:$4 sm:$0xff]   ;;  %v5800_v22 = vld [vmem:[#allocation5 + $0x72c] ss:$48 sps:$4 sm:$0xff]  }
  0x6b   :  { %1930 = vmatpush1.bf16.msra.mxu0 %v5717_v31  ;;  %v5792_v20 = vld [vmem:[#allocation5 + $0x788] ss:$48 sps:$4 sm:$0xff]   ;;  %v5803_v25 = vld [vmem:[#allocation5 + $0x3cc] ss:$48 sps:$4 sm:$0xff]   ;;  %p6622_p5 = por %p6621_p4, %p6620_p3 }
  0x6c   :  { %1973 = vmatpush1.bf16.msra.mxu1 %v5718_v32  ;;  %1931 = vmatprep.subr.bf16.mxu0 %v5719_v33  ;;  %v5795_v23 = vld [vmem:[#allocation5 + $0x428] ss:$48 sps:$4 sm:$0xff]   ;;  %v5806_v26 = vld [vmem:[#allocation5 + $0x6cc] ss:$48 sps:$4 sm:$0xff]  }
  0x6d   :  { %2001 = vmatprep.subr.bf16.mxu1 %v5724_v34  ;;  %v5798_v24 = vld [vmem:[#allocation5 + $0x728] ss:$48 sps:$4 sm:$0xff]   ;;  %v5809_v29 = vld [vmem:[#allocation5 + $0x36c] ss:$48 sps:$4 sm:$0xff]   ;;  %p6623_p6 = pnand %p6622_p5, %p6616_p2 }
  0x6e   :  { %v5801_v27 = vld [vmem:[#allocation5 + $0x3c8] ss:$48 sps:$4 sm:$0xff]   ;;  %v5812_v30 = vld [vmem:[#allocation5 + $0x66c] ss:$48 sps:$4 sm:$0xff]  }
  0x6f   :  { %1991 = vmatmul.mubr.bf16.vlgmr.msra.gmra.mxu1 %v6716_v35  ;;  %1932 = vmatpush2.bf16.msra.mxu0 %v5725_v37  ;;  %v5804_v28 = vld [vmem:[#allocation5 + $0x6c8] ss:$48 sps:$4 sm:$0xff]   ;;  %v5815_v33 = vld [vmem:[#allocation5 + $0x30c] ss:$48 sps:$4 sm:$0xff]  }
  0x70   :  { %2002 = vmatpush1.bf16.msra.mxu1 %v5722_v36  ;;  %1933 = vmatprep.subr.bf16.mxu0 %v5726_v38  ;;  %v5807_v31 = vld [vmem:[#allocation5 + $0x368] ss:$48 sps:$4 sm:$0xff]   ;;  %v5818_v34 = vld [vmem:[#allocation5 + $0x60c] ss:$48 sps:$4 sm:$0xff]   ;;  %v5821_v38 = vld [vmem:[#allocation5 + $0x2b4] ss:$48 sps:$4 sm:$0xff]  }
  0x71   :  { %2003 = vmatprep.subr.bf16.mxu1 %v5730_v39  ;;  %2033 = vmatprep.mubr.bf16.mxu1 %v6719_v51  ;;  %v5810_v32 = vld [vmem:[#allocation5 + $0x668] ss:$48 sps:$4 sm:$0xff]   ;;  %v5824_v39 = vld [vmem:[#allocation5 + $0x8b4] ss:$48 sps:$4 sm:$0xff]  }
  0x72   :  { %v5813_v36 = vld [vmem:[#allocation5 + $0x308] ss:$48 sps:$4 sm:$0xff]  }
  0x73   :  { %1934 = vmatpush2.bf16.msra.mxu0 %v5731_v41  ;;  %v5816_v37 = vld [vmem:[#allocation5 + $0x608] ss:$48 sps:$4 sm:$0xff]   ;;  %v5822_v41 = vld [vmem:[#allocation5 + $0x8b0] ss:$48 sps:$4 sm:$0xff]  }
  0x74   :  { %2004 = vmatpush1.bf16.msra.mxu1 %v5728_v40  ;;  %1935 = vmatprep.subr.bf16.mxu0 %v5732_v42  ;;  %v5819_v40 = vld [vmem:[#allocation5 + $0x2b0] ss:$48 sps:$4 sm:$0xff]   ;;  %v5827_v42 = vld [vmem:[#allocation5 + $0x254] ss:$48 sps:$4 sm:$0xff]  }
  0x75   :  { %2005 = vmatprep.subr.bf16.mxu1 %v5736_v43  ;;  %v5830_v43 = vld [vmem:[#allocation5 + $0x854] ss:$48 sps:$4 sm:$0xff]  }
  0x77   :  { %1936 = vmatpush2.bf16.msra.mxu0 %v5737_v45  ;;  %v5828_v45 = vld [vmem:[#allocation5 + $0x850] ss:$48 sps:$4 sm:$0xff]  }
  0x78   :  { %2006 = vmatpush1.bf16.msra.mxu1 %v5734_v44  ;;  %1937 = vmatprep.subr.bf16.mxu0 %v5738_v46  ;;  %v5825_v44 = vld [vmem:[#allocation5 + $0x250] ss:$48 sps:$4 sm:$0xff]   ;;  %v5833_v46 = vld [vmem:[#allocation5 + $0x1f4] ss:$48 sps:$4 sm:$0xff]  }
  0x79   :  { %2007 = vmatprep.subr.bf16.mxu1 %v5742_v47  ;;  %v5836_v47 = vld [vmem:[#allocation5 + $0x7f4] ss:$48 sps:$4 sm:$0xff]  }
  0x7b   :  { %1938 = vmatpush2.bf16.msra.mxu0 %v5743_v49  ;;  %v5834_v49 = vld [vmem:[#allocation5 + $0x7f0] ss:$48 sps:$4 sm:$0xff]  }
  0x7c   :  { %2008 = vmatpush1.bf16.msra.mxu1 %v5740_v48  ;;  %1939 = vmatprep.subr.bf16.mxu0 %v5744_v50  ;;  %v5831_v48 = vld [vmem:[#allocation5 + $0x1f0] ss:$48 sps:$4 sm:$0xff]   ;;  %v5839_v50 = vld [vmem:[#allocation5 + $0x194] ss:$48 sps:$4 sm:$0xff]  }
  0x7d   :  { %2009 = vmatprep.subr.bf16.mxu1 %v5748_v52  ;;  %v5842_v52 = vld [vmem:[#allocation5 + $0x794] ss:$48 sps:$4 sm:$0xff]  }
  0x7f   :  { %1940 = vmatpush2.bf16.msra.mxu0 %v5749_v54  ;;  %v5840_v54 = vld [vmem:[#allocation5 + $0x790] ss:$48 sps:$4 sm:$0xff]  }
  0x80   :  { %2010 = vmatpush1.bf16.msra.mxu1 %v5746_v53  ;;  %1941 = vmatprep.subr.bf16.mxu0 %v5750_v55  ;;  %v5837_v53 = vld [vmem:[#allocation5 + $0x190] ss:$48 sps:$4 sm:$0xff]   ;;  %v5845_v55 = vld [vmem:[#allocation5 + $0x134] ss:$48 sps:$4 sm:$0xff]  }
  0x81   :  { %2011 = vmatprep.subr.bf16.mxu1 %v5754_v56  ;;  %v5848_v56 = vld [vmem:[#allocation5 + $0x734] ss:$48 sps:$4 sm:$0xff]  }
  0x83   :  { %1942 = vmatpush2.bf16.msra.mxu0 %v5755_v58  ;;  %v5846_v58 = vld [vmem:[#allocation5 + $0x730] ss:$48 sps:$4 sm:$0xff]  }
  0x84   :  { %2012 = vmatpush1.bf16.msra.mxu1 %v5752_v57  ;;  %1943 = vmatprep.subr.bf16.mxu0 %v5756_v59  ;;  %v5843_v57 = vld [vmem:[#allocation5 + $0x130] ss:$48 sps:$4 sm:$0xff]   ;;  %v5851_v59 = vld [vmem:[#allocation5 + $0xd4] ss:$48 sps:$4 sm:$0xff]  }
  0x85   :  { %2013 = vmatprep.subr.bf16.mxu1 %v5760_v60  ;;  %v5854_v60 = vld [vmem:[#allocation5 + $0x6d4] ss:$48 sps:$4 sm:$0xff]  }
  0x87   :  { %1944 = vmatpush2.bf16.msra.mxu0 %v5761_v62  ;;  %v5852_v62 = vld [vmem:[#allocation5 + $0x6d0] ss:$48 sps:$4 sm:$0xff]  }
  0x88   :  { %2014 = vmatpush1.bf16.msra.mxu1 %v5758_v61  ;;  %1945 = vmatprep.subr.bf16.mxu0 %v5762_v63  ;;  %v5849_v61 = vld [vmem:[#allocation5 + $0xd0] ss:$48 sps:$4 sm:$0xff]   ;;  %v5857_v63 = vld [vmem:[#allocation5 + $0x74] ss:$48 sps:$4 sm:$0xff]  }
  0x89   :  { %2015 = vmatprep.subr.bf16.mxu1 %v5766_v1  ;;  %v5860_v1 = vld [vmem:[#allocation5 + $0x674] ss:$48 sps:$4 sm:$0xff]  }
  0x8b   :  { %1946 = vmatpush2.bf16.msra.mxu0 %v5767_v3  ;;  %v5858_v3 = vld [vmem:[#allocation5 + $0x670] ss:$48 sps:$4 sm:$0xff]  }
  0x8c   :  { %2016 = vmatpush1.bf16.msra.mxu1 %v5764_v2  ;;  %2044 = vmatprep.subr.bf16.mxu0 %v5776_v5  ;;  %v5855_v2 = vld [vmem:[#allocation5 + $0x70] ss:$48 sps:$4 sm:$0xff]   ;;  %v5866_v5 = vld [vmem:[#allocation5 + $0x614] ss:$48 sps:$4 sm:$0xff]  }
  0x8d   :  { %2017 = vmatprep.subr.bf16.mxu1 %v5773_v4  ;;  %v5863_v4 = vld [vmem:[#allocation5 + $0x14] ss:$48 sps:$4 sm:$0xff]  }
  0x8e   :  { %1948 = vmatmul.mubr.bf16.vlgmr.msra.gmra.mxu0 %v6723_v6 }
  0x8f   :  { %2045 = vmatpush1.bf16.msra.mxu0 %v5774_v8  ;;  %2076 = vmatprep.mubr.bf16.mxu0 %v6657_v0  ;;  %v5864_v8 = vld [vmem:[#allocation5 + $0x610] ss:$48 sps:$4 sm:$0xff]  }
  0x90   :  { %2018 = vmatpush2.bf16.msra.mxu1 %v5771_v7  ;;  %2046 = vmatprep.subr.bf16.mxu0 %v5782_v10  ;;  %v5861_v7 = vld [vmem:[#allocation5 + $0x10] ss:$48 sps:$4 sm:$0xff]   ;;  %v5872_v10 = vld [vmem:[#allocation5 + $0x2bc] ss:$48 sps:$4 sm:$0xff]  }
  0x91   :  { %2019 = vmatprep.subr.bf16.mxu1 %v5779_v9  ;;  %v5869_v9 = vld [vmem:[#allocation5 + $0x5b4] ss:$48 sps:$4 sm:$0xff]  }
  0x93   :  { %2047 = vmatpush1.bf16.msra.mxu0 %v5780_v12  ;;  %v5870_v12 = vld [vmem:[#allocation5 + $0x2b8] ss:$48 sps:$4 sm:$0xff]  }
  0x94   :  { %2020 = vmatpush2.bf16.msra.mxu1 %v5777_v11  ;;  %2048 = vmatprep.subr.bf16.mxu0 %v5788_v14  ;;  %v5867_v11 = vld [vmem:[#allocation5 + $0x5b0] ss:$48 sps:$4 sm:$0xff]   ;;  %v5878_v14 = vld [vmem:[#allocation5 + $0x25c] ss:$48 sps:$4 sm:$0xff]  }
  0x95   :  { %2021 = vmatprep.subr.bf16.mxu1 %v5785_v13  ;;  %v5875_v13 = vld [vmem:[#allocation5 + $0x554] ss:$48 sps:$4 sm:$0xff]  }
  0x97   :  { %2049 = vmatpush1.bf16.msra.mxu0 %v5786_v16  ;;  %v5876_v16 = vld [vmem:[#allocation5 + $0x258] ss:$48 sps:$4 sm:$0xff]  }
  0x98   :  { %2022 = vmatpush2.bf16.msra.mxu1 %v5783_v15  ;;  %2050 = vmatprep.subr.bf16.mxu0 %v5794_v18  ;;  %v5873_v15 = vld [vmem:[#allocation5 + $0x550] ss:$48 sps:$4 sm:$0xff]   ;;  %v5884_v18 = vld [vmem:[#allocation5 + $0x1fc] ss:$48 sps:$4 sm:$0xff]  }
  0x99   :  { %2023 = vmatprep.subr.bf16.mxu1 %v5791_v17  ;;  %v5881_v17 = vld [vmem:[#allocation5 + $0x4f4] ss:$48 sps:$4 sm:$0xff]  }
  0x9b   :  { %2051 = vmatpush1.bf16.msra.mxu0 %v5792_v20  ;;  %v5882_v20 = vld [vmem:[#allocation5 + $0x1f8] ss:$48 sps:$4 sm:$0xff]  }
  0x9c   :  { %2024 = vmatpush2.bf16.msra.mxu1 %v5789_v19  ;;  %2052 = vmatprep.subr.bf16.mxu0 %v5800_v22  ;;  %v5879_v19 = vld [vmem:[#allocation5 + $0x4f0] ss:$48 sps:$4 sm:$0xff]   ;;  %v5890_v22 = vld [vmem:[#allocation5 + $0x19c] ss:$48 sps:$4 sm:$0xff]  }
  0x9d   :  { %2025 = vmatprep.subr.bf16.mxu1 %v5797_v21  ;;  %v5887_v21 = vld [vmem:[#allocation5 + $0x494] ss:$48 sps:$4 sm:$0xff]  }
  0x9f   :  { %2053 = vmatpush1.bf16.msra.mxu0 %v5798_v24  ;;  %v5893_v24 = vld [vmem:[#allocation5 + $0x434] ss:$48 sps:$4 sm:$0xff]  }
  0xa0   :  { %2026 = vmatpush2.bf16.msra.mxu1 %v5795_v23  ;;  %2054 = vmatprep.subr.bf16.mxu0 %v5806_v26  ;;  %v5885_v23 = vld [vmem:[#allocation5 + $0x490] ss:$48 sps:$4 sm:$0xff]  }
  0xa1   :  { %2027 = vmatprep.subr.bf16.mxu1 %v5803_v25  ;;  %v5896_v25 = vld [vmem:[#allocation5 + $0x13c] ss:$48 sps:$4 sm:$0xff]   ;;  %v5891_v26 = vld [vmem:[#allocation5 + $0x430] ss:$48 sps:$4 sm:$0xff]  }
  0xa3   :  { %2055 = vmatpush1.bf16.msra.mxu0 %v5804_v28  ;;  %v5902_v28 = vld [vmem:[#allocation5 + $0xdc] ss:$48 sps:$4 sm:$0xff]  }
  0xa4   :  { %2028 = vmatpush2.bf16.msra.mxu1 %v5801_v27  ;;  %2056 = vmatprep.subr.bf16.mxu0 %v5812_v30  ;;  %v5899_v27 = vld [vmem:[#allocation5 + $0x3d4] ss:$48 sps:$4 sm:$0xff]   ;;  %v5900_v30 = vld [vmem:[#allocation5 + $0xd8] ss:$48 sps:$4 sm:$0xff]  }
  0xa5   :  { %2029 = vmatprep.subr.bf16.mxu1 %v5809_v29  ;;  %v5897_v29 = vld [vmem:[#allocation5 + $0x3d0] ss:$48 sps:$4 sm:$0xff]  }
  0xa7   :  { %2057 = vmatpush1.bf16.msra.mxu0 %v5810_v32  ;;  %v5908_v32 = vld [vmem:[#allocation5 + $0x7c] ss:$48 sps:$4 sm:$0xff]  }
  0xa8   :  { %2030 = vmatpush2.bf16.msra.mxu1 %v5807_v31  ;;  %2058 = vmatprep.subr.bf16.mxu0 %v5818_v34  ;;  %v5905_v31 = vld [vmem:[#allocation5 + $0x374] ss:$48 sps:$4 sm:$0xff]   ;;  %v5906_v34 = vld [vmem:[#allocation5 + $0x78] ss:$48 sps:$4 sm:$0xff]  }
  0xa9   :  { %2031 = vmatprep.subr.bf16.mxu1 %v5815_v33  ;;  %v5903_v33 = vld [vmem:[#allocation5 + $0x370] ss:$48 sps:$4 sm:$0xff]  }
  0xab   :  { %2059 = vmatpush1.bf16.msra.mxu0 %v5816_v37  ;;  %v5914_v37 = vld [vmem:[#allocation5 + $0x1c] ss:$48 sps:$4 sm:$0xff]  }
  0xac   :  { %2032 = vmatpush2.bf16.msra.mxu1 %v5813_v36  ;;  %2087 = vmatprep.subr.bf16.mxu0 %v5821_v38  ;;  %v5911_v36 = vld [vmem:[#allocation5 + $0x314] ss:$48 sps:$4 sm:$0xff]   ;;  %v5909_v38 = vld [vmem:[#allocation5 + $0x310] ss:$48 sps:$4 sm:$0xff]  }
  0xad   :  { %2130 = vmatprep.subr.bf16.mxu1 %v5824_v39  ;;  %v5912_v39 = vld [vmem:[#allocation5 + $0x18] ss:$48 sps:$4 sm:$0xff]  }
  0xae   :  { %2077 = vmatmul.mubr.bf16.vlgmr.msra.gmra.mxu0 %v6716_v35 }
  0xaf   :  { %2034 = vmatmul.mubr.bf16.vlgmr.msra.gmra.mxu1 %v6723_v6  ;;  %2088 = vmatpush1.bf16.msra.mxu0 %v5819_v40  ;;  %v5917_v40 = vld [vmem:[#allocation5 + $0x5bc] ss:$48 sps:$4 sm:$0xff]  }
  0xb0   :  { %2131 = vmatpush1.bf16.msra.mxu1 %v5822_v41  ;;  %2089 = vmatprep.subr.bf16.mxu0 %v5827_v42  ;;  %v5920_v41 = vld [vmem:[#allocation5 + $0x8bc] ss:$48 sps:$4 sm:$0xff]   ;;  %v5915_v42 = vld [vmem:[#allocation5 + $0x5b8] ss:$48 sps:$4 sm:$0xff]  }
  0xb1   :  { %2132 = vmatprep.subr.bf16.mxu1 %v5830_v43  ;;  %2162 = vmatprep.mubr.bf16.mxu1 %v6657_v0  ;;  %v5918_v43 = vld [vmem:[#allocation5 + $0x8b8] ss:$48 sps:$4 sm:$0xff]  }
  0xb2   :  { %2119 = vmatprep.mubr.bf16.mxu0 %v6719_v51 }
  0xb3   :  { %2090 = vmatpush1.bf16.msra.mxu0 %v5825_v44  ;;  %v5923_v44 = vld [vmem:[#allocation5 + $0x55c] ss:$48 sps:$4 sm:$0xff]  }
  0xb4   :  { %2133 = vmatpush1.bf16.msra.mxu1 %v5828_v45  ;;  %2091 = vmatprep.subr.bf16.mxu0 %v5833_v46  ;;  %v5926_v45 = vld [vmem:[#allocation5 + $0x85c] ss:$48 sps:$4 sm:$0xff]   ;;  %v5921_v46 = vld [vmem:[#allocation5 + $0x558] ss:$48 sps:$4 sm:$0xff]  }
  0xb5   :  { %2134 = vmatprep.subr.bf16.mxu1 %v5836_v47  ;;  %v5924_v47 = vld [vmem:[#allocation5 + $0x858] ss:$48 sps:$4 sm:$0xff]  }
  0xb7   :  { %2092 = vmatpush1.bf16.msra.mxu0 %v5831_v48  ;;  %v5929_v48 = vld [vmem:[#allocation5 + $0x4fc] ss:$48 sps:$4 sm:$0xff]  }
  0xb8   :  { %2135 = vmatpush1.bf16.msra.mxu1 %v5834_v49  ;;  %2093 = vmatprep.subr.bf16.mxu0 %v5839_v50  ;;  %v5932_v49 = vld [vmem:[#allocation5 + $0x7fc] ss:$48 sps:$4 sm:$0xff]   ;;  %v5927_v50 = vld [vmem:[#allocation5 + $0x4f8] ss:$48 sps:$4 sm:$0xff]  }
  0xb9   :  { %2136 = vmatprep.subr.bf16.mxu1 %v5842_v52  ;;  %v5930_v52 = vld [vmem:[#allocation5 + $0x7f8] ss:$48 sps:$4 sm:$0xff]  }
  0xbb   :  { %2094 = vmatpush1.bf16.msra.mxu0 %v5837_v53  ;;  %v5935_v53 = vld [vmem:[#allocation5 + $0x49c] ss:$48 sps:$4 sm:$0xff]  }
  0xbc   :  { %2137 = vmatpush1.bf16.msra.mxu1 %v5840_v54  ;;  %2095 = vmatprep.subr.bf16.mxu0 %v5845_v55  ;;  %v5938_v54 = vld [vmem:[#allocation5 + $0x79c] ss:$48 sps:$4 sm:$0xff]   ;;  %v5933_v55 = vld [vmem:[#allocation5 + $0x498] ss:$48 sps:$4 sm:$0xff]  }
  0xbd   :  { %2138 = vmatprep.subr.bf16.mxu1 %v5848_v56  ;;  %v5936_v56 = vld [vmem:[#allocation5 + $0x798] ss:$48 sps:$4 sm:$0xff]  }
  0xbf   :  { %2096 = vmatpush1.bf16.msra.mxu0 %v5843_v57  ;;  %v5941_v57 = vld [vmem:[#allocation5 + $0x43c] ss:$48 sps:$4 sm:$0xff]  }
  0xc0   :  { %2139 = vmatpush1.bf16.msra.mxu1 %v5846_v58  ;;  %2097 = vmatprep.subr.bf16.mxu0 %v5851_v59  ;;  %v5944_v58 = vld [vmem:[#allocation5 + $0x73c] ss:$48 sps:$4 sm:$0xff]   ;;  %v5939_v59 = vld [vmem:[#allocation5 + $0x438] ss:$48 sps:$4 sm:$0xff]  }
  0xc1   :  { %2140 = vmatprep.subr.bf16.mxu1 %v5854_v60  ;;  %v5942_v60 = vld [vmem:[#allocation5 + $0x738] ss:$48 sps:$4 sm:$0xff]  }
  0xc3   :  { %2098 = vmatpush1.bf16.msra.mxu0 %v5849_v61  ;;  %v5947_v61 = vld [vmem:[#allocation5 + $0x3dc] ss:$48 sps:$4 sm:$0xff]  }
  0xc4   :  { %2141 = vmatpush1.bf16.msra.mxu1 %v5852_v62  ;;  %2099 = vmatprep.subr.bf16.mxu0 %v5857_v63  ;;  %v5950_v62 = vld [vmem:[#allocation5 + $0x6dc] ss:$48 sps:$4 sm:$0xff]   ;;  %v5945_v63 = vld [vmem:[#allocation5 + $0x3d8] ss:$48 sps:$4 sm:$0xff]  }
  0xc5   :  { %2142 = vmatprep.subr.bf16.mxu1 %v5860_v1  ;;  %v5948_v1 = vld [vmem:[#allocation5 + $0x6d8] ss:$48 sps:$4 sm:$0xff]  }
  0xc7   :  { %2100 = vmatpush1.bf16.msra.mxu0 %v5855_v2  ;;  %v5953_v2 = vld [vmem:[#allocation5 + $0x37c] ss:$48 sps:$4 sm:$0xff]  }
  0xc8   :  { %2143 = vmatpush1.bf16.msra.mxu1 %v5858_v3  ;;  %2101 = vmatprep.subr.bf16.mxu0 %v5863_v4  ;;  %v5956_v3 = vld [vmem:[#allocation5 + $0x67c] ss:$48 sps:$4 sm:$0xff]   ;;  %v5951_v4 = vld [vmem:[#allocation5 + $0x378] ss:$48 sps:$4 sm:$0xff]  }
  0xc9   :  { %2144 = vmatprep.subr.bf16.mxu1 %v5866_v5  ;;  %v5954_v5 = vld [vmem:[#allocation5 + $0x678] ss:$48 sps:$4 sm:$0xff]  }
  0xcb   :  { %2102 = vmatpush1.bf16.msra.mxu0 %v5861_v7  ;;  %v5959_v7 = vld [vmem:[#allocation5 + $0x31c] ss:$48 sps:$4 sm:$0xff]  }
  0xcc   :  { %2145 = vmatpush1.bf16.msra.mxu1 %v5864_v8  ;;  %2103 = vmatprep.subr.bf16.mxu0 %v5869_v9  ;;  %v5962_v8 = vld [vmem:[#allocation5 + $0x61c] ss:$48 sps:$4 sm:$0xff]   ;;  %v5957_v9 = vld [vmem:[#allocation5 + $0x318] ss:$48 sps:$4 sm:$0xff]  }
  0xcd   :  { %2173 = vmatprep.subr.bf16.mxu1 %v5872_v10  ;;  %v5960_v10 = vld [vmem:[#allocation5 + $0x618] ss:$48 sps:$4 sm:$0xff]  }
  0xcf   :  { %2163 = vmatmul.mubr.bf16.vlgmr.msra.gmra.mxu1 %v6716_v35  ;;  %2104 = vmatpush2.bf16.msra.mxu0 %v5867_v11  ;;  %v5888_v35 = vld [vmem:[#allocation5 + $0x198] ss:$48 sps:$4 sm:$0xff]   ;;  %v5965_v11 = vld [vmem:[#allocation5 + $0x2c4] ss:$48 sps:$4 sm:$0xff]  }
  0xd0   :  { %2174 = vmatpush1.bf16.msra.mxu1 %v5870_v12  ;;  %2105 = vmatprep.subr.bf16.mxu0 %v5875_v13  ;;  %v5968_v12 = vld [vmem:[#allocation5 + $0x8c4] ss:$48 sps:$4 sm:$0xff]   ;;  %v5963_v13 = vld [vmem:[#allocation5 + $0x2c0] ss:$48 sps:$4 sm:$0xff]  }
  0xd1   :  { %2175 = vmatprep.subr.bf16.mxu1 %v5878_v14  ;;  %2205 = vmatprep.mubr.bf16.mxu1 %v6719_v51  ;;  %v5894_v51 = vld [vmem:[#allocation5 + $0x138] ss:$48 sps:$4 sm:$0xff]   ;;  %v5966_v14 = vld [vmem:[#allocation5 + $0x8c0] ss:$48 sps:$4 sm:$0xff]  }
  0xd3   :  { %2106 = vmatpush2.bf16.msra.mxu0 %v5873_v15  ;;  %v5971_v15 = vld [vmem:[#allocation5 + $0x264] ss:$48 sps:$4 sm:$0xff]  }
  0xd4   :  { %2176 = vmatpush1.bf16.msra.mxu1 %v5876_v16  ;;  %2107 = vmatprep.subr.bf16.mxu0 %v5881_v17  ;;  %v5974_v16 = vld [vmem:[#allocation5 + $0x864] ss:$48 sps:$4 sm:$0xff]   ;;  %v6736_v17 = vld [vmem:[#allocation2 + $0x8] ss:$12 sps:$4 sm:$0xff]  }
  0xd5   :  { %2177 = vmatprep.subr.bf16.mxu1 %v5884_v18  ;;  %v5969_v18 = vld [vmem:[#allocation5 + $0x260] ss:$48 sps:$4 sm:$0xff]  }
  0xd7   :  { %2108 = vmatpush2.bf16.msra.mxu0 %v5879_v19  ;;  %v5972_v19 = vld [vmem:[#allocation5 + $0x860] ss:$48 sps:$4 sm:$0xff]  }
  0xd8   :  { %2178 = vmatpush1.bf16.msra.mxu1 %v5882_v20  ;;  %2109 = vmatprep.subr.bf16.mxu0 %v5887_v21  ;;  %v5977_v20 = vld [vmem:[#allocation5 + $0x204] ss:$48 sps:$4 sm:$0xff]  }
  0xd9   :  { %2179 = vmatprep.subr.bf16.mxu1 %v5890_v22  ;;  %v5980_v21 = vld [vmem:[#allocation5 + $0x804] ss:$48 sps:$4 sm:$0xff]   ;;  %v6740_v22 = vld [vmem:[#allocation2 + $0x4] ss:$12 sps:$4 sm:$0xff]  }
  0xdb   :  { %2110 = vmatpush2.bf16.msra.mxu0 %v5885_v23  ;;  %v5975_v23 = vld [vmem:[#allocation5 + $0x200] ss:$48 sps:$4 sm:$0xff]  }
  0xdc   :  { %2180 = vmatpush1.bf16.msra.mxu1 %v5888_v35  ;;  %2111 = vmatprep.subr.bf16.mxu0 %v5893_v24  ;;  %v5983_v35 = vld [vmem:[#allocation5 + $0x1a4] ss:$48 sps:$4 sm:$0xff]  }
  0xdd   :  { %2181 = vmatprep.subr.bf16.mxu1 %v5896_v25  ;;  %v5986_v24 = vld [vmem:[#allocation5 + $0x7a4] ss:$48 sps:$4 sm:$0xff]   ;;  %v5981_v25 = vld [vmem:[#allocation5 + $0x1a0] ss:$48 sps:$4 sm:$0xff]  }
  0xdf   :  { %2112 = vmatpush2.bf16.msra.mxu0 %v5891_v26  ;;  %v5984_v26 = vld [vmem:[#allocation5 + $0x7a0] ss:$48 sps:$4 sm:$0xff]  }
  0xe0   :  { %2182 = vmatpush1.bf16.msra.mxu1 %v5894_v51  ;;  %2113 = vmatprep.subr.bf16.mxu0 %v5899_v27  ;;  %v5989_v51 = vld [vmem:[#allocation5 + $0x144] ss:$48 sps:$4 sm:$0xff]  }
  0xe1   :  { %2183 = vmatprep.subr.bf16.mxu1 %v5902_v28  ;;  %v5992_v27 = vld [vmem:[#allocation5 + $0x744] ss:$48 sps:$4 sm:$0xff]   ;;  %v5987_v28 = vld [vmem:[#allocation5 + $0x140] ss:$48 sps:$4 sm:$0xff]  }
  0xe3   :  { %2114 = vmatpush2.bf16.msra.mxu0 %v5897_v29  ;;  %v5990_v29 = vld [vmem:[#allocation5 + $0x740] ss:$48 sps:$4 sm:$0xff]  }
  0xe4   :  { %2184 = vmatpush1.bf16.msra.mxu1 %v5900_v30  ;;  %2115 = vmatprep.subr.bf16.mxu0 %v5905_v31  ;;  %v5995_v30 = vld [vmem:[#allocation5 + $0xe4] ss:$48 sps:$4 sm:$0xff]  }
  0xe5   :  { %2185 = vmatprep.subr.bf16.mxu1 %v5908_v32  ;;  %v5998_v31 = vld [vmem:[#allocation5 + $0x6e4] ss:$48 sps:$4 sm:$0xff]   ;;  %v5993_v32 = vld [vmem:[#allocation5 + $0xe0] ss:$48 sps:$4 sm:$0xff]  }
  0xe7   :  { %2116 = vmatpush2.bf16.msra.mxu0 %v5903_v33  ;;  %v5996_v33 = vld [vmem:[#allocation5 + $0x6e0] ss:$48 sps:$4 sm:$0xff]  }
  0xe8   :  { %2186 = vmatpush1.bf16.msra.mxu1 %v5906_v34  ;;  %2117 = vmatprep.subr.bf16.mxu0 %v5911_v36  ;;  %v6001_v34 = vld [vmem:[#allocation5 + $0x84] ss:$48 sps:$4 sm:$0xff]  }
  0xe9   :  { %2187 = vmatprep.subr.bf16.mxu1 %v5914_v37  ;;  %v6004_v36 = vld [vmem:[#allocation5 + $0x684] ss:$48 sps:$4 sm:$0xff]   ;;  %v5999_v37 = vld [vmem:[#allocation5 + $0x80] ss:$48 sps:$4 sm:$0xff]  }
  0xeb   :  { %2118 = vmatpush2.bf16.msra.mxu0 %v5909_v38  ;;  %v6002_v38 = vld [vmem:[#allocation5 + $0x680] ss:$48 sps:$4 sm:$0xff]  }
  0xec   :  { %2188 = vmatpush1.bf16.msra.mxu1 %v5912_v39  ;;  %2216 = vmatprep.subr.bf16.mxu0 %v5920_v41  ;;  %v6007_v39 = vld [vmem:[#allocation5 + $0x24] ss:$48 sps:$4 sm:$0xff]   ;;  %v6005_v41 = vld [vmem:[#allocation5 + $0x20] ss:$48 sps:$4 sm:$0xff]  }
  0xed   :  { %2189 = vmatprep.subr.bf16.mxu1 %v5917_v40  ;;  %v6010_v40 = vld [vmem:[#allocation5 + $0x624] ss:$48 sps:$4 sm:$0xff]  }
  0xee   :  { %2120 = vmatmul.mubr.bf16.vlgmr.msra.gmra.mxu0 %v6723_v6 }
  0xef   :  { %2217 = vmatpush1.bf16.msra.mxu0 %v5918_v43  ;;  %2248 = vmatprep.mubr.bf16.mxu0 %v6657_v0  ;;  %v6013_v43 = vld [vmem:[#allocation5 + $0x5c4] ss:$48 sps:$4 sm:$0xff]  }
  0xf0   :  { %2190 = vmatpush2.bf16.msra.mxu1 %v5915_v42  ;;  %2218 = vmatprep.subr.bf16.mxu0 %v5926_v45  ;;  %v6008_v42 = vld [vmem:[#allocation5 + $0x620] ss:$48 sps:$4 sm:$0xff]  }
  0xf1   :  { %2191 = vmatprep.subr.bf16.mxu1 %v5923_v44  ;;  %v6016_v44 = vld [vmem:[#allocation5 + $0x2cc] ss:$48 sps:$4 sm:$0xff]   ;;  %v6011_v45 = vld [vmem:[#allocation5 + $0x5c0] ss:$48 sps:$4 sm:$0xff]  }
  0xf3   :  { %2219 = vmatpush1.bf16.msra.mxu0 %v5924_v47  ;;  %v6019_v47 = vld [vmem:[#allocation5 + $0x564] ss:$48 sps:$4 sm:$0xff]  }
  0xf4   :  { %2192 = vmatpush2.bf16.msra.mxu1 %v5921_v46  ;;  %2220 = vmatprep.subr.bf16.mxu0 %v5932_v49  ;;  %v6014_v46 = vld [vmem:[#allocation5 + $0x2c8] ss:$48 sps:$4 sm:$0xff]   ;;  %v6017_v49 = vld [vmem:[#allocation5 + $0x560] ss:$48 sps:$4 sm:$0xff]  }
  0xf5   :  { %2193 = vmatprep.subr.bf16.mxu1 %v5929_v48  ;;  %v6022_v48 = vld [vmem:[#allocation5 + $0x26c] ss:$48 sps:$4 sm:$0xff]  }
  0xf7   :  { %2221 = vmatpush1.bf16.msra.mxu0 %v5930_v52  ;;  %v6025_v52 = vld [vmem:[#allocation5 + $0x504] ss:$48 sps:$4 sm:$0xff]  }
  0xf8   :  { %2194 = vmatpush2.bf16.msra.mxu1 %v5927_v50  ;;  %2222 = vmatprep.subr.bf16.mxu0 %v5938_v54  ;;  %v6020_v50 = vld [vmem:[#allocation5 + $0x268] ss:$48 sps:$4 sm:$0xff]   ;;  %v6023_v54 = vld [vmem:[#allocation5 + $0x500] ss:$48 sps:$4 sm:$0xff]  }
  0xf9   :  { %2195 = vmatprep.subr.bf16.mxu1 %v5935_v53  ;;  %v6028_v53 = vld [vmem:[#allocation5 + $0x20c] ss:$48 sps:$4 sm:$0xff]  }
  0xfb   :  { %2223 = vmatpush1.bf16.msra.mxu0 %v5936_v56  ;;  %v6031_v56 = vld [vmem:[#allocation5 + $0x4a4] ss:$48 sps:$4 sm:$0xff]  }
  0xfc   :  { %2196 = vmatpush2.bf16.msra.mxu1 %v5933_v55  ;;  %2224 = vmatprep.subr.bf16.mxu0 %v5944_v58  ;;  %v6026_v55 = vld [vmem:[#allocation5 + $0x208] ss:$48 sps:$4 sm:$0xff]   ;;  %v6029_v58 = vld [vmem:[#allocation5 + $0x4a0] ss:$48 sps:$4 sm:$0xff]  }
  0xfd   :  { %2197 = vmatprep.subr.bf16.mxu1 %v5941_v57  ;;  %v6034_v57 = vld [vmem:[#allocation5 + $0x1ac] ss:$48 sps:$4 sm:$0xff]  }
  0xff   :  { %2225 = vmatpush1.bf16.msra.mxu0 %v5942_v60  ;;  %v6037_v60 = vld [vmem:[#allocation5 + $0x444] ss:$48 sps:$4 sm:$0xff]  }
 0x100   :  { %2198 = vmatpush2.bf16.msra.mxu1 %v5939_v59  ;;  %2226 = vmatprep.subr.bf16.mxu0 %v5950_v62  ;;  %v6032_v59 = vld [vmem:[#allocation5 + $0x1a8] ss:$48 sps:$4 sm:$0xff]   ;;  %v6035_v62 = vld [vmem:[#allocation5 + $0x440] ss:$48 sps:$4 sm:$0xff]  }
 0x101   :  { %2199 = vmatprep.subr.bf16.mxu1 %v5947_v61  ;;  %v6040_v61 = vld [vmem:[#allocation5 + $0x14c] ss:$48 sps:$4 sm:$0xff]  }
 0x103   :  { %2227 = vmatpush1.bf16.msra.mxu0 %v5948_v1  ;;  %v6043_v1 = vld [vmem:[#allocation5 + $0x3e4] ss:$48 sps:$4 sm:$0xff]  }
 0x104   :  { %2200 = vmatpush2.bf16.msra.mxu1 %v5945_v63  ;;  %2228 = vmatprep.subr.bf16.mxu0 %v5956_v3  ;;  %v6038_v63 = vld [vmem:[#allocation5 + $0x148] ss:$48 sps:$4 sm:$0xff]   ;;  %v6041_v3 = vld [vmem:[#allocation5 + $0x3e0] ss:$48 sps:$4 sm:$0xff]  }
 0x105   :  { %2201 = vmatprep.subr.bf16.mxu1 %v5953_v2  ;;  %v6046_v2 = vld [vmem:[#allocation5 + $0xec] ss:$48 sps:$4 sm:$0xff]  }
 0x107   :  { %2229 = vmatpush1.bf16.msra.mxu0 %v5954_v5  ;;  %v6049_v5 = vld [vmem:[#allocation5 + $0x384] ss:$48 sps:$4 sm:$0xff]  }
 0x108   :  { %2202 = vmatpush2.bf16.msra.mxu1 %v5951_v4  ;;  %2230 = vmatprep.subr.bf16.mxu0 %v5962_v8  ;;  %v6044_v4 = vld [vmem:[#allocation5 + $0xe8] ss:$48 sps:$4 sm:$0xff]   ;;  %v6052_v8 = vld [vmem:[#allocation5 + $0x8c] ss:$48 sps:$4 sm:$0xff]  }
 0x109   :  { %2203 = vmatprep.subr.bf16.mxu1 %v5959_v7  ;;  %v399_v7 = vlaneseq }
 0x10b   :  { %2231 = vmatpush1.bf16.msra.mxu0 %v5960_v10  ;;  %v6050_v10 = vld [vmem:[#allocation5 + $0x88] ss:$48 sps:$4 sm:$0xff]  }
 0x10c   :  { %2204 = vmatpush2.bf16.msra.mxu1 %v5957_v9  ;;  %2259 = vmatprep.subr.bf16.mxu0 %v5965_v11  ;;  %v6047_v9 = vld [vmem:[#allocation5 + $0x380] ss:$48 sps:$4 sm:$0xff]   ;;  %v6055_v11 = vld [vmem:[#allocation5 + $0x324] ss:$48 sps:$4 sm:$0xff]  }
 0x10d   :  { %2302 = vmatprep.subr.bf16.mxu1 %v5968_v12  ;;  %v6745_v12 = vshrl.u32 %v399_v7, 7  ;;  %v6101_v7 = vld [vmem:[#allocation5 + $0x328] ss:$48 sps:$4 sm:$0xff]  }
 0x10e   :  { %2249 = vmatmul.mubr.bf16.vlgmr.msra.gmra.mxu0 %v6736_v17 }
 0x10f   :  { %2206 = vmatmul.mubr.bf16.vlgmr.msra.gmra.mxu1 %v6723_v6  ;;  %2260 = vmatpush1.bf16.msra.mxu0 %v5963_v13  ;;  %v5978_v6 = vld [vmem:[#allocation5 + $0x800] ss:$48 sps:$4 sm:$0xff]   ;;  %v6058_v13 = vld [vmem:[#allocation5 + $0x2c] ss:$48 sps:$4 sm:$0xff]  }
 0x110   :  { %2303 = vmatpush1.bf16.msra.mxu1 %v5966_v14  ;;  %2261 = vmatprep.subr.bf16.mxu0 %v5971_v15  ;;  %v6053_v14 = vld [vmem:[#allocation5 + $0x320] ss:$48 sps:$4 sm:$0xff]   ;;  %v6056_v15 = vld [vmem:[#allocation5 + $0x28] ss:$48 sps:$4 sm:$0xff]  }
 0x111   :  { %2304 = vmatprep.subr.bf16.mxu1 %v5974_v16  ;;  %2334 = vmatprep.mubr.bf16.mxu1 %v6657_v0  ;;  %v6747_v16 = vld [vmem:[#allocation7] sm:$0xff] }
 0x112   :  { %2291 = vmatprep.mubr.bf16.mxu0 %v6740_v22 }
 0x113   :  { %2262 = vmatpush1.bf16.msra.mxu0 %v5969_v18  ;;  %v6750_v18 = vsub.s32 0, %v6745_v12 }
 0x114   :  { %2305 = vmatpush1.bf16.msra.mxu1 %v5972_v19  ;;  %2263 = vmatprep.subr.bf16.mxu0 %v5977_v20  ;;  %v6061_v19 = vld [vmem:[#allocation5 + $0x5cc] ss:$48 sps:$4 sm:$0xff]  }
 0x115   :  { %2306 = vmatprep.subr.bf16.mxu1 %v5980_v21  ;;  %v6064_v20 = vld [vmem:[#allocation5 + $0x8cc] ss:$48 sps:$4 sm:$0xff]   ;;  %v6059_v21 = vld [vmem:[#allocation5 + $0x5c8] ss:$48 sps:$4 sm:$0xff]  }
 0x117   :  { %2264 = vmatpush1.bf16.msra.mxu0 %v5975_v23  ;;  %v402_v23 = vrot.slane %v6747_v16, %v6750_v18 }
 0x118   :  { %2307 = vmatpush1.bf16.msra.mxu1 %v5978_v6  ;;  %2265 = vmatprep.subr.bf16.mxu0 %v5983_v35  ;;  %v6067_v6 = vld [vmem:[#allocation5 + $0x56c] ss:$48 sps:$4 sm:$0xff]  }
 0x119   :  { %2308 = vmatprep.subr.bf16.mxu1 %v5986_v24  ;;  %v6070_v24 = vld [vmem:[#allocation5 + $0x86c] ss:$48 sps:$4 sm:$0xff]  }
 0x11b   :  { %2266 = vmatpush1.bf16.msra.mxu0 %v5981_v25 }
 0x11c   :  { %2309 = vmatpush1.bf16.msra.mxu1 %v5984_v26  ;;  %2267 = vmatprep.subr.bf16.mxu0 %v5989_v51  ;;  %v6754_v26 = vld [vmem:[#allocation2] ss:$12 sps:$4 sm:$0xff]  }
 0x11d   :  { %2310 = vmatprep.subr.bf16.mxu1 %v5992_v27  ;;  %v6065_v51 = vld [vmem:[#allocation5 + $0x568] ss:$48 sps:$4 sm:$0xff]  }
 0x11e   :  { %v6068_v27 = vld [vmem:[#allocation5 + $0x868] ss:$48 sps:$4 sm:$0xff]  }
 0x11f   :  { %2268 = vmatpush1.bf16.msra.mxu0 %v5987_v28 }
 0x120   :  { %2311 = vmatpush1.bf16.msra.mxu1 %v5990_v29  ;;  %2269 = vmatprep.subr.bf16.mxu0 %v5995_v30  ;;  %v6073_v29 = vld [vmem:[#allocation5 + $0x50c] ss:$48 sps:$4 sm:$0xff]  }
 0x121   :  { %2312 = vmatprep.subr.bf16.mxu1 %v5998_v31 }
 0x123   :  { %2270 = vmatpush1.bf16.msra.mxu0 %v5993_v32  ;;  %v6076_v32 = vld [vmem:[#allocation5 + $0x80c] ss:$48 sps:$4 sm:$0xff]  }
 0x124   :  { %2313 = vmatpush1.bf16.msra.mxu1 %v5996_v33  ;;  %2271 = vmatprep.subr.bf16.mxu0 %v6001_v34  ;;  %v6071_v34 = vld [vmem:[#allocation5 + $0x508] ss:$48 sps:$4 sm:$0xff]  }
 0x125   :  { %2314 = vmatprep.subr.bf16.mxu1 %v6004_v36 }
 0x127   :  { %2272 = vmatpush1.bf16.msra.mxu0 %v5999_v37  ;;  %v6074_v37 = vld [vmem:[#allocation5 + $0x808] ss:$48 sps:$4 sm:$0xff]  }
 0x128   :  { %2315 = vmatpush1.bf16.msra.mxu1 %v6002_v38  ;;  %2273 = vmatprep.subr.bf16.mxu0 %v6007_v39  ;;  %v6079_v38 = vld [vmem:[#allocation5 + $0x4ac] ss:$48 sps:$4 sm:$0xff]  }
 0x129   :  { %2316 = vmatprep.subr.bf16.mxu1 %v6010_v40  ;;  %v6082_v39 = vld [vmem:[#allocation5 + $0x7ac] ss:$48 sps:$4 sm:$0xff]  }
 0x12b   :  { %2274 = vmatpush1.bf16.msra.mxu0 %v6005_v41 }
 0x12c   :  { %2317 = vmatpush1.bf16.msra.mxu1 %v6008_v42  ;;  %2275 = vmatprep.subr.bf16.mxu0 %v6013_v43  ;;  %v6077_v43 = vld [vmem:[#allocation5 + $0x4a8] ss:$48 sps:$4 sm:$0xff]  }
 0x12d   :  { %2345 = vmatprep.subr.bf16.mxu1 %v6016_v44  ;;  %v6080_v44 = vld [vmem:[#allocation5 + $0x7a8] ss:$48 sps:$4 sm:$0xff]  }
 0x12f   :  { %2335 = vmatmul.mubr.bf16.vlgmr.msra.gmra.mxu1 %v6736_v17  ;;  %2276 = vmatpush2.bf16.msra.mxu0 %v6011_v45  ;;  %v1992_v35 = vpop.f32.mrf.mxu1  ;;  %v6085_v45 = vld [vmem:[#allocation5 + $0x44c] ss:$48 sps:$4 sm:$0xff]  }
 0x130   :  { %2346 = vmatpush1.bf16.msra.mxu1 %v6014_v46  ;;  %2277 = vmatprep.subr.bf16.mxu0 %v6019_v47  ;;  %v6088_v46 = vld [vmem:[#allocation5 + $0x74c] ss:$48 sps:$4 sm:$0xff]  }
 0x131   :  { %2347 = vmatprep.subr.bf16.mxu1 %v6022_v48  ;;  %2377 = vmatprep.mubr.bf16.mxu1 %v6740_v22  ;;  %v6062_v22 = vld [vmem:[#allocation5 + $0x8c8] ss:$48 sps:$4 sm:$0xff]   ;;  %v6757_v30 = vpop.f32.mrf.mxu1 }
 0x133   :  { %2278 = vmatpush2.bf16.msra.mxu0 %v6017_v49  ;;  %v1996_v41 = vpop.f32.mrf.mxu1  ;;  %v6083_v49 = vld [vmem:[#allocation5 + $0x448] ss:$48 sps:$4 sm:$0xff]  }
 0x134   :  { %2348 = vmatpush1.bf16.msra.mxu1 %v6020_v50  ;;  %2279 = vmatprep.subr.bf16.mxu0 %v6025_v52  ;;  %v6086_v50 = vld [vmem:[#allocation5 + $0x748] ss:$48 sps:$4 sm:$0xff]   ;;  %v6091_v52 = vld [vmem:[#allocation5 + $0x3ec] ss:$48 sps:$4 sm:$0xff]  }
 0x135   :  { %2349 = vmatprep.subr.bf16.mxu1 %v6028_v53  ;;  %v6094_v53 = vld [vmem:[#allocation5 + $0x6ec] ss:$48 sps:$4 sm:$0xff]  }
 0x137   :  { %2280 = vmatpush2.bf16.msra.mxu0 %v6023_v54  ;;  %v6763_v54 = vsub.s32 1, %v6745_v12 }
 0x138   :  { %2350 = vmatpush1.bf16.msra.mxu1 %v6026_v55  ;;  %2281 = vmatprep.subr.bf16.mxu0 %v6031_v56  ;;  %v6089_v55 = vld [vmem:[#allocation5 + $0x3e8] ss:$48 sps:$4 sm:$0xff]  }
 0x139   :  { %2351 = vmatprep.subr.bf16.mxu1 %v6034_v57  ;;  %v6092_v57 = vld [vmem:[#allocation5 + $0x6e8] ss:$48 sps:$4 sm:$0xff]  }
 0x13b   :  { %2282 = vmatpush2.bf16.msra.mxu0 %v6029_v58  ;;  %v406_v58 = vrot.slane %v6747_v16, %v6763_v54 }
 0x13c   :  { %2352 = vmatpush1.bf16.msra.mxu1 %v6032_v59  ;;  %2283 = vmatprep.subr.bf16.mxu0 %v6037_v60  ;;  %v6097_v59 = vld [vmem:[#allocation5 + $0x38c] ss:$48 sps:$4 sm:$0xff]  }
 0x13d   :  { %2353 = vmatprep.subr.bf16.mxu1 %v6040_v61  ;;  %v6100_v60 = vld [vmem:[#allocation5 + $0x68c] ss:$48 sps:$4 sm:$0xff]  }
 0x13f   :  { %2284 = vmatpush2.bf16.msra.mxu0 %v6035_v62  ;;  %v6095_v62 = vld [vmem:[#allocation5 + $0x388] ss:$48 sps:$4 sm:$0xff]  }
 0x140   :  { %2354 = vmatpush1.bf16.msra.mxu1 %v6038_v63  ;;  %2285 = vmatprep.subr.bf16.mxu0 %v6043_v1  ;;  %v6098_v63 = vld [vmem:[#allocation5 + $0x688] ss:$48 sps:$4 sm:$0xff]  }
 0x141   :  { %2355 = vmatprep.subr.bf16.mxu1 %v6046_v2  ;;  %v1998_v2 = vpop.f32.mrf.mxu1 }
 0x143   :  { %2286 = vmatpush2.bf16.msra.mxu0 %v6041_v3  ;;  %v6103_v3 = vld [vmem:[#allocation5 + $0x32c] ss:$48 sps:$4 sm:$0xff]  }
 0x144   :  { %2356 = vmatpush1.bf16.msra.mxu1 %v6044_v4  ;;  %2287 = vmatprep.subr.bf16.mxu0 %v6049_v5  ;;  %v6106_v4 = vld [vmem:[#allocation5 + $0x62c] ss:$48 sps:$4 sm:$0xff]  }
 0x145   :  { %2357 = vmatprep.subr.bf16.mxu1 %v6052_v8  ;;  %v6104_v8 = vld [vmem:[#allocation5 + $0x628] ss:$48 sps:$4 sm:$0xff]  }
 0x147   :  { %2288 = vmatpush2.bf16.msra.mxu0 %v6047_v9 }
 0x148   :  { %2358 = vmatpush1.bf16.msra.mxu1 %v6050_v10  ;;  %2289 = vmatprep.subr.bf16.mxu0 %v6055_v11  ;;  %v6109_v10 = vld [vmem:[#allocation8 + $0xac] ss:$12 sps:$4 sm:$0xff]  }
 0x149   :  { %2359 = vmatprep.subr.bf16.mxu1 %v6058_v13  ;;  %v6112_v11 = vld [vmem:[#allocation8 + $0x22c] ss:$12 sps:$4 sm:$0xff]  }
 0x14b   :  { %2290 = vmatpush2.bf16.msra.mxu0 %v6053_v14  ;;  %v6107_v14 = vld [vmem:[#allocation8 + $0xa8] ss:$12 sps:$4 sm:$0xff]  }
 0x14c   :  { %2360 = vmatpush1.bf16.msra.mxu1 %v6056_v15  ;;  %2388 = vmatprep.subr.bf16.mxu0 %v6064_v20  ;;  %v413_v15 = vsub.s32 3, %v6745_v12  ;;  %v6115_v20 = vld [vmem:[#allocation8 + $0x94] ss:$12 sps:$4 sm:$0xff]  }
 0x14d   :  { %2361 = vmatprep.subr.bf16.mxu1 %v6061_v19  ;;  %v6110_v19 = vld [vmem:[#allocation8 + $0x228] ss:$12 sps:$4 sm:$0xff]  }
 0x14e   :  { %v1949_v25 = vpop.f32.mrf.mxu0  ;;  %2292 = vmatmul.mubr.bf16.vlgmr.msra.gmra.mxu0 %v6754_v26 }
 0x14f   :  { %v1950_v28 = vadd.f32 %v1949_v25, %v402_v23  ;;  %2389 = vmatpush1.bf16.msra.mxu0 %v6062_v22  ;;  %2420 = vmatprep.mubr.bf16.mxu0 %v6657_v0 }
 0x150   :  { %2362 = vmatpush2.bf16.msra.mxu1 %v6059_v21  ;;  %v1951_v31 = vpop.f32.mrf.mxu0  ;;  %2390 = vmatprep.subr.bf16.mxu0 %v6070_v24 }
 0x151   :  { %2363 = vmatprep.subr.bf16.mxu1 %v6067_v6  ;;  %v1993_v33 = vadd.f32 %v1992_v35, %v1950_v28  ;;  %v1952_v1 = vadd.f32 %v1951_v31, %v406_v58  ;;  %v6113_v6 = vld [vmem:[#allocation8 + $0x90] ss:$12 sps:$4 sm:$0xff]   ;;  %v6118_v35 = vld [vmem:[#allocation8 + $0x214] ss:$12 sps:$4 sm:$0xff]   ;;  %v6119_v31 = vld [vmem:[#allocation8 + $0x78] ss:$12 sps:$4 sm:$0xff]  }
 0x152   :  { %v1953_v36 = vpop.f32.mrf.mxu0 }
 0x153   :  { %v1954_v40 = vadd.f32 %v1953_v36, %v402_v23  ;;  %2391 = vmatpush1.bf16.msra.mxu0 %v6068_v27  ;;  %v2431_v47 = vmax.f32 %v1993_v33, 0.0  ;;  %v1995_v9 = vadd.f32 %v6757_v30, %v1952_v1  ;;  %v414_v23 = vrot.slane %v6747_v16, %v413_v15  ;;  %v6121_v27 = vld [vmem:[#allocation8 + $0x7c] ss:$12 sps:$4 sm:$0xff]   ;;  %v6152_v1 = vld [vmem:[#allocation8 + $0x180] ss:$12 sps:$4 sm:$0xff]  }
 0x154   :  { %2364 = vmatpush2.bf16.msra.mxu1 %v6065_v51  ;;  %2392 = vmatprep.subr.bf16.mxu0 %v6076_v32  ;;  %v1955_v56 = vpop.f32.mrf.mxu0  ;;  %v6116_v51 = vld [vmem:[#allocation8 + $0x210] ss:$12 sps:$4 sm:$0xff]  }
 0x155   :  { %2365 = vmatprep.subr.bf16.mxu1 %v6073_v29  ;;  %v1997_v42 = vadd.f32 %v1996_v41, %v1954_v40  ;;  %v1956_v61 = vadd.f32 %v1955_v56, %v406_v58  ;;  %v2432_v21 = vmax.f32 %v1995_v9, 0.0  ;;  %v6124_v32 = vld [vmem:[#allocation8 + $0x1fc] ss:$12 sps:$4 sm:$0xff]   ;;  %v6125_v40 = vld [vmem:[#allocation8 + $0x60] ss:$12 sps:$4 sm:$0xff]  }
 0x156   :  { %v6140_v56 = vld [vmem:[#allocation8 + $0x1b0] ss:$12 sps:$4 sm:$0xff]   ;;  %v6166_v9 = vld [vmem:[#allocation8 + $0x2d4] ss:$12 sps:$4 sm:$0xff]  }
 0x157   :  { %v2443_v48 = vmax.f32 %v1997_v42, 0.0  ;;  %2393 = vmatpush1.bf16.msra.mxu0 %v6074_v37  ;;  %v1999_v5 = vadd.f32 %v1998_v2, %v1956_v61  ;;  %v6127_v37 = vld [vmem:[#allocation8 + $0x64] ss:$12 sps:$4 sm:$0xff]   ;;  %v6128_v42 = vld [vmem:[#allocation8 + $0x1e0] ss:$12 sps:$4 sm:$0xff]  }
 0x158   :  { %2366 = vmatpush2.bf16.msra.mxu1 %v6071_v34  ;;  %2394 = vmatprep.subr.bf16.mxu0 %v6082_v39  ;;  %v6148_v58 = vld [vmem:[#allocation8 + $0x19c] ss:$12 sps:$4 sm:$0xff]   ;;  %v6151_v61 = vld [vmem:[#allocation8 + $0x4] ss:$12 sps:$4 sm:$0xff]   ;;  %v6157_v2 = vld [vmem:[#allocation8 + $0x16c] ss:$12 sps:$4 sm:$0xff]  }
 0x159   :  { %2367 = vmatprep.subr.bf16.mxu1 %v6079_v38  ;;  %v6760_v0 = vpack.c.bf16 %v2443_v48, %v2431_v47  ;;  %v2444_v13 = vmax.f32 %v1999_v5, 0.0  ;;  %v6130_v38 = vld [vmem:[#allocation8 + $0x1e4] ss:$12 sps:$4 sm:$0xff]   ;;  %v6158_v5 = vld [vmem:[#allocation8 + $0x2e8] ss:$12 sps:$4 sm:$0xff]  }
 0x15b   :  { %2395 = vmatpush1.bf16.msra.mxu0 %v6080_v44  ;;  %v6769_v22 = vpack.c.bf16 %v2444_v13, %v2432_v21  ;;  %v6133_v44 = vld [vmem:[#allocation8 + $0x4c] ss:$12 sps:$4 sm:$0xff]  }
 0x15c   :  { %2368 = vmatpush2.bf16.msra.mxu1 %v6077_v43  ;;  %2396 = vmatprep.subr.bf16.mxu0 %v6088_v46  ;;  %v6167_v13 = vld [vmem:[#allocation8 + $0x138] ss:$12 sps:$4 sm:$0xff]   ;;  %v6173_v21 = vld [vmem:[#allocation8 + $0x120] ss:$12 sps:$4 sm:$0xff]  }
 0x15d   :  { %2369 = vmatprep.subr.bf16.mxu1 %v6085_v45  ;;  %v6136_v45 = vld [vmem:[#allocation8 + $0x1cc] ss:$12 sps:$4 sm:$0xff]  }
 0x15f   :  { %2397 = vmatpush1.bf16.msra.mxu0 %v6086_v50  ;;  %v6134_v50 = vld [vmem:[#allocation8 + $0x1c8] ss:$12 sps:$4 sm:$0xff]  }
 0x160   :  { %2370 = vmatpush2.bf16.msra.mxu1 %v6083_v49  ;;  %2398 = vmatprep.subr.bf16.mxu0 %v6094_v53  ;;  %v6131_v49 = vld [vmem:[#allocation8 + $0x48] ss:$12 sps:$4 sm:$0xff]  }
 0x161   :  { %2371 = vmatprep.subr.bf16.mxu1 %v6091_v52  ;;  %v6139_v52 = vld [vmem:[#allocation8 + $0x34] ss:$12 sps:$4 sm:$0xff]  }
 0x162   :  { %v6142_v53 = vld [vmem:[#allocation8 + $0x1b4] ss:$12 sps:$4 sm:$0xff]  }
 0x163   :  { %2399 = vmatpush1.bf16.msra.mxu0 %v6092_v57  ;;  %v6145_v57 = vld [vmem:[#allocation8 + $0x1c] ss:$12 sps:$4 sm:$0xff]  }
 0x164   :  { %2372 = vmatpush2.bf16.msra.mxu1 %v6089_v55  ;;  %2400 = vmatprep.subr.bf16.mxu0 %v6100_v60  ;;  %v6137_v55 = vld [vmem:[#allocation8 + $0x30] ss:$12 sps:$4 sm:$0xff]   ;;  %v6146_v60 = vld [vmem:[#allocation8 + $0x198] ss:$12 sps:$4 sm:$0xff]  }
 0x165   :  { %2373 = vmatprep.subr.bf16.mxu1 %v6097_v59  ;;  %v6143_v59 = vld [vmem:[#allocation8 + $0x18] ss:$12 sps:$4 sm:$0xff]  }
 0x167   :  { %2401 = vmatpush1.bf16.msra.mxu0 %v6098_v63  ;;  %v6149_v63 = vld [vmem:[#allocation8] ss:$12 sps:$4 sm:$0xff]  }
 0x168   :  { %2374 = vmatpush2.bf16.msra.mxu1 %v6095_v62  ;;  %2402 = vmatprep.subr.bf16.mxu0 %v6106_v4  ;;  %v6154_v62 = vld [vmem:[#allocation8 + $0x184] ss:$12 sps:$4 sm:$0xff]   ;;  %v6155_v4 = vld [vmem:[#allocation8 + $0x168] ss:$12 sps:$4 sm:$0xff]  }
 0x169   :  { %2375 = vmatprep.subr.bf16.mxu1 %v6103_v3  ;;  %v6160_v3 = vld [vmem:[#allocation8 + $0x2ec] ss:$12 sps:$4 sm:$0xff]  }
 0x16b   :  { %2403 = vmatpush1.bf16.msra.mxu0 %v6104_v8  ;;  %v6161_v8 = vld [vmem:[#allocation8 + $0x150] ss:$12 sps:$4 sm:$0xff]  }
 0x16c   :  { %2376 = vmatpush2.bf16.msra.mxu1 %v6101_v7  ;;  %4404 = vmatprep.subr.bf16.mxu0 %v6109_v10  ;;  %v6163_v7 = vld [vmem:[#allocation8 + $0x154] ss:$12 sps:$4 sm:$0xff]   ;;  %v6164_v10 = vld [vmem:[#allocation8 + $0x2d0] ss:$12 sps:$4 sm:$0xff]  }
 0x16d   :  { %4447 = vmatprep.subr.bf16.mxu1 %v6112_v11  ;;  %v6169_v11 = vld [vmem:[#allocation8 + $0x13c] ss:$12 sps:$4 sm:$0xff]  }
 0x16e   :  { %v6776_v25 = vpop.f32.mrf.mxu0  ;;  %2421 = vmatmul.mubr.bf16.vlgmr.msra.gmra.mxu0 %v6736_v17 }
 0x16f   :  { %v6774_v24 = vpop.f32.mrf.mxu1  ;;  %2378 = vmatmul.mubr.bf16.vlgmr.msra.gmra.mxu1 %v6754_v26  ;;  %4405 = vmatpush1.bf16.msra.mxu0 %v6107_v14  ;;  %v6122_v26 = vld [vmem:[#allocation8 + $0x1f8] ss:$12 sps:$4 sm:$0xff]   ;;  %v6172_v14 = vld [vmem:[#allocation8 + $0x2bc] ss:$12 sps:$4 sm:$0xff]  }
 0x170   :  { %4436 = vmatprep.mubr.bf16.mxu0 %v6769_v22  ;;  %4448 = vmatpush1.bf16.msra.mxu1 %v6110_v19  ;;  %v2080_v29 = vpop.f32.mrf.mxu0  ;;  %v6170_v19 = vld [vmem:[#allocation8 + $0x2b8] ss:$12 sps:$4 sm:$0xff]  }
 0x171   :  { %v2037_v28 = vpop.f32.mrf.mxu1  ;;  %4406 = vmatprep.subr.bf16.mxu0 %v6115_v20  ;;  %4449 = vmatprep.subr.bf16.mxu1 %v6118_v35  ;;  %v6175_v20 = vld [vmem:[#allocation8 + $0x124] ss:$12 sps:$4 sm:$0xff]   ;;  %v6181_v35 = vld [vmem:[#allocation8 + $0x10c] ss:$12 sps:$4 sm:$0xff]  }
 0x172   :  { %v2038_v30 = vadd.f32 %v2037_v28, %v414_v23  ;;  %v6783_v34 = vpop.f32.mrf.mxu0  ;;  %v6184_v28 = vld [vmem:[#allocation8 + $0x28c] ss:$12 sps:$4 sm:$0xff]  }
 0x173   :  { %v6781_v33 = vpop.f32.mrf.mxu1  ;;  %4407 = vmatpush1.bf16.msra.mxu0 %v6113_v6  ;;  %v6176_v6 = vld [vmem:[#allocation8 + $0x2a0] ss:$12 sps:$4 sm:$0xff]  }
 0x174   :  { %v2081_v17 = vadd.f32 %v2080_v29, %v2038_v30  ;;  %4450 = vmatpush1.bf16.msra.mxu1 %v6116_v51  ;;  %4408 = vmatprep.subr.bf16.mxu0 %v6121_v27  ;;  %v2084_v41 = vpop.f32.mrf.mxu0  ;;  %v6789_v51 = vsub.s32 2, %v6745_v12  ;;  %v6179_v27 = vld [vmem:[#allocation8 + $0x108] ss:$12 sps:$4 sm:$0xff]  }
 0x175   :  { %v2041_v36 = vpop.f32.mrf.mxu1  ;;  %4451 = vmatprep.subr.bf16.mxu1 %v6124_v32  ;;  %v6182_v29 = vld [vmem:[#allocation8 + $0x288] ss:$12 sps:$4 sm:$0xff]  }
 0x176   :  { %v2042_v39 = vadd.f32 %v2041_v36, %v414_v23  ;;  %v2434_v46 = vmax.f32 %v2081_v17, 0.0  ;;  %v6178_v23 = vld [vmem:[#allocation8 + $0x2a4] ss:$12 sps:$4 sm:$0xff]   ;;  %v6187_v30 = vld [vmem:[#allocation8 + $0xf4] ss:$12 sps:$4 sm:$0xff]   ;;  %v410_v32 = vrot.slane %v6747_v16, %v6789_v51 }
 0x177   :  { %4409 = vmatpush1.bf16.msra.mxu0 %v6119_v31  ;;  %v6190_v31 = vld [vmem:[#allocation8 + $0x274] ss:$12 sps:$4 sm:$0xff]   ;;  %v6188_v17 = vld [vmem:[#allocation8 + $0x270] ss:$12 sps:$4 sm:$0xff]  }
 0x178   :  { %v2085_v43 = vadd.f32 %v2084_v41, %v2042_v39  ;;  %4452 = vmatpush1.bf16.msra.mxu1 %v6122_v26  ;;  %4410 = vmatprep.subr.bf16.mxu0 %v6127_v37  ;;  %v6185_v26 = vld [vmem:[#allocation8 + $0xf0] ss:$12 sps:$4 sm:$0xff]   ;;  %v2040_v37 = vadd.f32 %v6781_v33, %v410_v32  ;;  %v2036_v39 = vadd.f32 %v6774_v24, %v410_v32  ;;  %v6194_v41 = vld [vmem:[#allocation8 + $0x258] ss:$12 sps:$4 sm:$0xff]   ;;  %v6200_v33 = vld [vmem:[#allocation8 + $0x240] ss:$12 sps:$4 sm:$0xff]  }
 0x179   :  { %4453 = vmatprep.subr.bf16.mxu1 %v6130_v38  ;;  %v6193_v36 = vld [vmem:[#allocation8 + $0xdc] ss:$12 sps:$4 sm:$0xff]   ;;  %v421_v24 = vsub.s32 5, %v6745_v12  ;;  %v6238_v32 = vld [vmem:[#allocation8 + $0x4b4] ss:$12 sps:$4 sm:$0xff]  }
 0x17a   :  { %v2446_v47 = vmax.f32 %v2085_v43, 0.0  ;;  %v6196_v38 = vld [vmem:[#allocation8 + $0x25c] ss:$12 sps:$4 sm:$0xff]   ;;  %v2083_v43 = vadd.f32 %v6783_v34, %v2040_v37 }
 0x17b   :  { %4411 = vmatpush1.bf16.msra.mxu0 %v6125_v40  ;;  %v6191_v40 = vld [vmem:[#allocation8 + $0xd8] ss:$12 sps:$4 sm:$0xff]   ;;  %v6206_v34 = vld [vmem:[#allocation8 + $0x528] ss:$12 sps:$4 sm:$0xff]  }
 0x17c   :  { %v6785_v48 = vpack.c.bf16 %v2446_v47, %v2434_v46  ;;  %4454 = vmatpush1.bf16.msra.mxu1 %v6128_v42  ;;  %4412 = vmatprep.subr.bf16.mxu0 %v6133_v44  ;;  %v6199_v42 = vld [vmem:[#allocation8 + $0xc4] ss:$12 sps:$4 sm:$0xff]   ;;  %v2079_v46 = vadd.f32 %v6776_v25, %v2036_v39  ;;  %v6205_v47 = vld [vmem:[#allocation8 + $0x3ac] ss:$12 sps:$4 sm:$0xff]   ;;  %v6244_v37 = vld [vmem:[#allocation8 + $0x49c] ss:$12 sps:$4 sm:$0xff]  }
 0x17d   :  { %4455 = vmatprep.subr.bf16.mxu1 %v6136_v45  ;;  %v6202_v44 = vld [vmem:[#allocation8 + $0x244] ss:$12 sps:$4 sm:$0xff]   ;;  %v6197_v45 = vld [vmem:[#allocation8 + $0xc0] ss:$12 sps:$4 sm:$0xff]  }
 0x17e   :  { %4479 = vmatprep.mubr.bf16.mxu1 %v6785_v48  ;;  %v6242_v39 = vld [vmem:[#allocation8 + $0x498] ss:$12 sps:$4 sm:$0xff]  }
 0x17f   :  { %4413 = vmatpush1.bf16.msra.mxu0 %v6131_v49  ;;  %v6208_v49 = vld [vmem:[#allocation8 + $0x52c] ss:$12 sps:$4 sm:$0xff]  }
 0x180   :  { %4456 = vmatpush1.bf16.msra.mxu1 %v6134_v50  ;;  %4414 = vmatprep.subr.bf16.mxu0 %v6139_v52  ;;  %v2445_v50 = vmax.f32 %v2083_v43, 0.0  ;;  %v6203_v52 = vld [vmem:[#allocation8 + $0x3a8] ss:$12 sps:$4 sm:$0xff]   ;;  %v6248_v43 = vld [vmem:[#allocation8 + $0x480] ss:$12 sps:$4 sm:$0xff]  }
 0x181   :  { %4457 = vmatprep.subr.bf16.mxu1 %v6142_v53 }
 0x183   :  { %4415 = vmatpush1.bf16.msra.mxu0 %v6137_v55  ;;  %v2433_v55 = vmax.f32 %v2079_v46, 0.0  ;;  %v429_v46 = vsub.s32 7, %v6745_v12 }
 0x184   :  { %4458 = vmatpush1.bf16.msra.mxu1 %v6140_v56  ;;  %4416 = vmatprep.subr.bf16.mxu0 %v6145_v57  ;;  %v6211_v56 = vld [vmem:[#allocation8 + $0x394] ss:$12 sps:$4 sm:$0xff]   ;;  %v422_v57 = vrot.slane %v6747_v16, %v421_v24 }
 0x185   :  { %4459 = vmatprep.subr.bf16.mxu1 %v6148_v58  ;;  %v6800_v25 = vpack.c.bf16 %v2445_v50, %v2433_v55  ;;  %v6209_v58 = vld [vmem:[#allocation8 + $0x390] ss:$12 sps:$4 sm:$0xff]   ;;  %v6494_v50 = vld [vmem:[#allocation7] sm:$0xff] }
 0x186   :  { %v430_v24 = vrot.slane %v6494_v50, %v429_v46  ;;  %v6287_v46 = vld [vmem:[#allocation8 + $0x3d8] ss:$12 sps:$4 sm:$0xff]  }
 0x187   :  { %4417 = vmatpush1.bf16.msra.mxu0 %v6143_v59  ;;  %v6214_v59 = vld [vmem:[#allocation8 + $0x514] ss:$12 sps:$4 sm:$0xff]  }
 0x188   :  { %4460 = vmatpush1.bf16.msra.mxu1 %v6146_v60  ;;  %4418 = vmatprep.subr.bf16.mxu0 %v6151_v61 }
 0x189   :  { %4461 = vmatprep.subr.bf16.mxu1 %v6154_v62  ;;  %v6212_v62 = vld [vmem:[#allocation8 + $0x510] ss:$12 sps:$4 sm:$0xff]  }
 0x18b   :  { %4419 = vmatpush1.bf16.msra.mxu0 %v6149_v63 }
 0x18c   :  { %4462 = vmatpush1.bf16.msra.mxu1 %v6152_v1  ;;  %4420 = vmatprep.subr.bf16.mxu0 %v6157_v2  ;;  %v6217_v1 = vld [vmem:[#allocation8 + $0x37c] ss:$12 sps:$4 sm:$0xff]  }
 0x18d   :  { %4463 = vmatprep.subr.bf16.mxu1 %v6160_v3  ;;  %v6220_v3 = vld [vmem:[#allocation8 + $0x4fc] ss:$12 sps:$4 sm:$0xff]  }
 0x18f   :  { %4421 = vmatpush2.bf16.msra.mxu0 %v6155_v4  ;;  %v6798_v53 = vpop.f32.mrf.mxu1 }
 0x190   :  { %4464 = vmatpush2.bf16.msra.mxu1 %v6158_v5  ;;  %4422 = vmatprep.subr.bf16.mxu0 %v6163_v7  ;;  %v6215_v5 = vld [vmem:[#allocation8 + $0x378] ss:$12 sps:$4 sm:$0xff]  }
 0x191   :  { %4465 = vmatprep.subr.bf16.mxu1 %v6166_v9  ;;  %v2166_v60 = vpop.f32.mrf.mxu1  ;;  %v6218_v7 = vld [vmem:[#allocation8 + $0x4f8] ss:$12 sps:$4 sm:$0xff]  }
 0x192   :  { %v6223_v9 = vld [vmem:[#allocation8 + $0x364] ss:$12 sps:$4 sm:$0xff]  }
 0x193   :  { %4423 = vmatpush2.bf16.msra.mxu0 %v6161_v8  ;;  %v6807_v4 = vpop.f32.mrf.mxu1 }
 0x194   :  { %4466 = vmatpush2.bf16.msra.mxu1 %v6164_v10  ;;  %4424 = vmatprep.subr.bf16.mxu0 %v6169_v11 }
 0x195   :  { %4467 = vmatprep.subr.bf16.mxu1 %v6172_v14  ;;  %v2170_v14 = vpop.f32.mrf.mxu1 }
 0x197   :  { %4425 = vmatpush2.bf16.msra.mxu0 %v6167_v13  ;;  %v6226_v13 = vld [vmem:[#allocation8 + $0x4e4] ss:$12 sps:$4 sm:$0xff]  }
 0x198   :  { %4468 = vmatpush2.bf16.msra.mxu1 %v6170_v19  ;;  %4426 = vmatprep.subr.bf16.mxu0 %v6175_v20  ;;  %v6221_v19 = vld [vmem:[#allocation8 + $0x360] ss:$12 sps:$4 sm:$0xff]  }
 0x199   :  { %4469 = vmatprep.subr.bf16.mxu1 %v6178_v23  ;;  %v6229_v23 = vld [vmem:[#allocation8 + $0x34c] ss:$12 sps:$4 sm:$0xff]  }
 0x19b   :  { %4427 = vmatpush2.bf16.msra.mxu0 %v6173_v21  ;;  %v6224_v21 = vld [vmem:[#allocation8 + $0x4e0] ss:$12 sps:$4 sm:$0xff]  }
 0x19c   :  { %4470 = vmatpush2.bf16.msra.mxu1 %v6176_v6  ;;  %4428 = vmatprep.subr.bf16.mxu0 %v6181_v35 }
 0x19d   :  { %4471 = vmatprep.subr.bf16.mxu1 %v6184_v28  ;;  %v6232_v28 = vld [vmem:[#allocation8 + $0x4cc] ss:$12 sps:$4 sm:$0xff]  }
 0x19f   :  { %4429 = vmatpush2.bf16.msra.mxu0 %v6179_v27  ;;  %v6227_v27 = vld [vmem:[#allocation8 + $0x348] ss:$12 sps:$4 sm:$0xff]  }
 0x1a0   :  { %4472 = vmatpush2.bf16.msra.mxu1 %v6182_v29  ;;  %4430 = vmatprep.subr.bf16.mxu0 %v6187_v30  ;;  %v6230_v29 = vld [vmem:[#allocation8 + $0x4c8] ss:$12 sps:$4 sm:$0xff]  }
 0x1a1   :  { %4473 = vmatprep.subr.bf16.mxu1 %v6190_v31  ;;  %v6235_v31 = vld [vmem:[#allocation8 + $0x334] ss:$12 sps:$4 sm:$0xff]  }
 0x1a3   :  { %4431 = vmatpush2.bf16.msra.mxu0 %v6185_v26  ;;  %v6233_v26 = vld [vmem:[#allocation8 + $0x330] ss:$12 sps:$4 sm:$0xff]  }
 0x1a4   :  { %4474 = vmatpush2.bf16.msra.mxu1 %v6188_v17  ;;  %4432 = vmatprep.subr.bf16.mxu0 %v6193_v36  ;;  %v6236_v17 = vld [vmem:[#allocation8 + $0x4b0] ss:$12 sps:$4 sm:$0xff]  }
 0x1a5   :  { %4475 = vmatprep.subr.bf16.mxu1 %v6196_v38  ;;  %v6241_v36 = vld [vmem:[#allocation8 + $0x31c] ss:$12 sps:$4 sm:$0xff]   ;;  %v6239_v38 = vld [vmem:[#allocation8 + $0x318] ss:$12 sps:$4 sm:$0xff]  }
 0x1a7   :  { %4433 = vmatpush2.bf16.msra.mxu0 %v6191_v40  ;;  %v6247_v40 = vld [vmem:[#allocation8 + $0x304] ss:$12 sps:$4 sm:$0xff]  }
 0x1a8   :  { %4476 = vmatpush2.bf16.msra.mxu1 %v6194_v41  ;;  %4434 = vmatprep.subr.bf16.mxu0 %v6199_v42  ;;  %v6250_v41 = vld [vmem:[#allocation8 + $0x484] ss:$12 sps:$4 sm:$0xff]   ;;  %v6245_v42 = vld [vmem:[#allocation8 + $0x300] ss:$12 sps:$4 sm:$0xff]  }
 0x1a9   :  { %4477 = vmatprep.subr.bf16.mxu1 %v6202_v44  ;;  %v6253_v44 = vld [vmem:[#allocation8 + $0x46c] ss:$12 sps:$4 sm:$0xff]  }
 0x1ab   :  { %4435 = vmatpush2.bf16.msra.mxu0 %v6197_v45  ;;  %v6256_v45 = vld [vmem:[#allocation8 + $0x5ec] ss:$12 sps:$4 sm:$0xff]  }
 0x1ac   :  { %4478 = vmatpush2.bf16.msra.mxu1 %v6200_v33  ;;  %4490 = vmatprep.subr.bf16.mxu0 %v6205_v47  ;;  %v6251_v33 = vld [vmem:[#allocation8 + $0x468] ss:$12 sps:$4 sm:$0xff]  }
 0x1ad   :  { %4533 = vmatprep.subr.bf16.mxu1 %v6208_v49  ;;  %v6254_v47 = vld [vmem:[#allocation8 + $0x5e8] ss:$12 sps:$4 sm:$0xff]  }
 0x1ae   :  { %v6803_v61 = vpop.f32.mrf.mxu0  ;;  %4437 = vmatmul.mubr.bf16.vlgmr.msra.gmra.mxu0 %v6760_v0  ;;  %v6259_v49 = vld [vmem:[#allocation8 + $0x454] ss:$12 sps:$4 sm:$0xff]  }
 0x1af   :  { %4480 = vmatmul.mubr.bf16.vlgmr.msra.gmra.mxu1 %v6800_v25  ;;  %4491 = vmatpush1.bf16.msra.mxu0 %v6203_v52  ;;  %v6262_v52 = vld [vmem:[#allocation8 + $0x5d4] ss:$12 sps:$4 sm:$0xff]  }
 0x1b0   :  { %4534 = vmatpush1.bf16.msra.mxu1 %v6206_v34  ;;  %v2123_v63 = vpop.f32.mrf.mxu0  ;;  %4492 = vmatprep.subr.bf16.mxu0 %v6211_v56  ;;  %v6257_v56 = vld [vmem:[#allocation8 + $0x450] ss:$12 sps:$4 sm:$0xff]  }
 0x1b1   :  { %v2124_v2 = vadd.f32 %v2123_v63, %v422_v57  ;;  %4535 = vmatprep.subr.bf16.mxu1 %v6214_v59  ;;  %v6260_v59 = vld [vmem:[#allocation8 + $0x5d0] ss:$12 sps:$4 sm:$0xff]  }
 0x1b2   :  { %v6809_v16 = vpop.f32.mrf.mxu0  ;;  %v6268_v63 = vld [vmem:[#allocation8 + $0x5bc] ss:$12 sps:$4 sm:$0xff]  }
 0x1b3   :  { %4493 = vmatpush1.bf16.msra.mxu0 %v6209_v58  ;;  %v2167_v10 = vadd.f32 %v2166_v60, %v2124_v2  ;;  %v6265_v60 = vld [vmem:[#allocation8 + $0x43c] ss:$12 sps:$4 sm:$0xff]  }
 0x1b4   :  { %4536 = vmatpush1.bf16.msra.mxu1 %v6212_v62  ;;  %v2127_v8 = vpop.f32.mrf.mxu0  ;;  %4494 = vmatprep.subr.bf16.mxu0 %v6217_v1 }
 0x1b5   :  { %v2128_v11 = vadd.f32 %v2127_v8, %v422_v57  ;;  %4537 = vmatprep.subr.bf16.mxu1 %v6220_v3  ;;  %v2436_v6 = vmax.f32 %v2167_v10, 0.0  ;;  %v6263_v3 = vld [vmem:[#allocation8 + $0x438] ss:$12 sps:$4 sm:$0xff]  }
 0x1b6   :  { %v6271_v8 = vld [vmem:[#allocation8 + $0x424] ss:$12 sps:$4 sm:$0xff]  }
 0x1b7   :  { %v2171_v20 = vadd.f32 %v2170_v14, %v2128_v11  ;;  %4495 = vmatpush1.bf16.msra.mxu0 %v6215_v5  ;;  %v6266_v5 = vld [vmem:[#allocation8 + $0x5b8] ss:$12 sps:$4 sm:$0xff]   ;;  %v425_v14 = vsub.s32 6, %v6745_v12 }
 0x1b8   :  { %4538 = vmatpush1.bf16.msra.mxu1 %v6218_v7  ;;  %4496 = vmatprep.subr.bf16.mxu0 %v6223_v9  ;;  %v6274_v11 = vld [vmem:[#allocation8 + $0x5a4] ss:$12 sps:$4 sm:$0xff]  }
 0x1b9   :  { %v2448_v35 = vmax.f32 %v2171_v20, 0.0  ;;  %4539 = vmatprep.subr.bf16.mxu1 %v6226_v13  ;;  %v417_v13 = vsub.s32 4, %v6745_v12 }
 0x1bb   :  { %4497 = vmatpush1.bf16.msra.mxu0 %v6221_v19  ;;  %v6811_v30 = vpack.c.bf16 %v2448_v35, %v2436_v6  ;;  %v6277_v6 = vld [vmem:[#allocation8 + $0x40c] ss:$12 sps:$4 sm:$0xff]  }
 0x1bc   :  { %4540 = vmatpush1.bf16.msra.mxu1 %v6224_v21  ;;  %4498 = vmatprep.subr.bf16.mxu0 %v6229_v23  ;;  %v6269_v21 = vld [vmem:[#allocation8 + $0x420] ss:$12 sps:$4 sm:$0xff]  }
 0x1bd   :  { %4522 = vmatprep.mubr.bf16.mxu0 %v6811_v30  ;;  %4541 = vmatprep.subr.bf16.mxu1 %v6232_v28  ;;  %v6272_v23 = vld [vmem:[#allocation8 + $0x5a0] ss:$12 sps:$4 sm:$0xff]   ;;  %v6275_v28 = vld [vmem:[#allocation8 + $0x408] ss:$12 sps:$4 sm:$0xff]  }
 0x1bf   :  { %4499 = vmatpush1.bf16.msra.mxu0 %v6227_v27 }
 0x1c0   :  { %4542 = vmatpush1.bf16.msra.mxu1 %v6230_v29  ;;  %4500 = vmatprep.subr.bf16.mxu0 %v6235_v31  ;;  %v6280_v29 = vld [vmem:[#allocation8 + $0x58c] ss:$12 sps:$4 sm:$0xff]   ;;  %v6278_v31 = vld [vmem:[#allocation8 + $0x588] ss:$12 sps:$4 sm:$0xff]  }
 0x1c1   :  { %4543 = vmatprep.subr.bf16.mxu1 %v6238_v32 }
 0x1c3   :  { %4501 = vmatpush1.bf16.msra.mxu0 %v6233_v26  ;;  %v6283_v26 = vld [vmem:[#allocation8 + $0x3f4] ss:$12 sps:$4 sm:$0xff]  }
 0x1c4   :  { %4544 = vmatpush1.bf16.msra.mxu1 %v6236_v17  ;;  %4502 = vmatprep.subr.bf16.mxu0 %v6241_v36  ;;  %v6286_v17 = vld [vmem:[#allocation8 + $0x574] ss:$12 sps:$4 sm:$0xff]   ;;  %v418_v36 = vrot.slane %v6494_v50, %v417_v13  ;;  %v6331_v13 = vld [vmem:[#allocation8 + $0x7e4] ss:$12 sps:$4 sm:$0xff]  }
 0x1c5   :  { %4545 = vmatprep.subr.bf16.mxu1 %v6244_v37  ;;  %v426_v37 = vrot.slane %v6494_v50, %v425_v14  ;;  %v6298_v50 = vld [vmem:[#allocation8 + $0x544] ss:$12 sps:$4 sm:$0xff]   ;;  %v6308_v14 = vld [vmem:[#allocation8 + $0x660] ss:$12 sps:$4 sm:$0xff]  }
 0x1c7   :  { %4503 = vmatpush1.bf16.msra.mxu0 %v6239_v38  ;;  %v6281_v38 = vld [vmem:[#allocation8 + $0x3f0] ss:$12 sps:$4 sm:$0xff]  }
 0x1c8   :  { %4546 = vmatpush1.bf16.msra.mxu1 %v6242_v39  ;;  %4504 = vmatprep.subr.bf16.mxu0 %v6247_v40  ;;  %v2126_v39 = vadd.f32 %v6809_v16, %v418_v36  ;;  %v6284_v40 = vld [vmem:[#allocation8 + $0x570] ss:$12 sps:$4 sm:$0xff]  }
 0x1c9   :  { %4547 = vmatprep.subr.bf16.mxu1 %v6250_v41  ;;  %v6289_v41 = vld [vmem:[#allocation8 + $0x3dc] ss:$12 sps:$4 sm:$0xff]  }
 0x1cb   :  { %4505 = vmatpush1.bf16.msra.mxu0 %v6245_v42 }
 0x1cc   :  { %4548 = vmatpush1.bf16.msra.mxu1 %v6248_v43  ;;  %4506 = vmatprep.subr.bf16.mxu0 %v6253_v44  ;;  %v6292_v43 = vld [vmem:[#allocation8 + $0x55c] ss:$12 sps:$4 sm:$0xff]   ;;  %v2122_v44 = vadd.f32 %v6803_v61, %v418_v36  ;;  %v6334_v36 = vld [vmem:[#allocation8 + $0x604] ss:$12 sps:$4 sm:$0xff]  }
 0x1cd   :  { %4549 = vmatprep.subr.bf16.mxu1 %v6256_v45 }
 0x1ce   :  { %v6817_v55 = vpop.f32.mrf.mxu0 }
 0x1cf   :  { %v6815_v34 = vpop.f32.mrf.mxu1  ;;  %4507 = vmatpush2.bf16.msra.mxu0 %v6251_v33  ;;  %v2169_v33 = vadd.f32 %v6807_v4, %v2126_v39  ;;  %v6313_v4 = vld [vmem:[#allocation8 + $0x82c] ss:$12 sps:$4 sm:$0xff]  }
 0x1d0   :  { %4550 = vmatpush2.bf16.msra.mxu1 %v6254_v47  ;;  %v2252_v58 = vpop.f32.mrf.mxu0  ;;  %4508 = vmatprep.subr.bf16.mxu0 %v6259_v49  ;;  %v2208_v45 = vadd.f32 %v6815_v34, %v426_v37  ;;  %v6290_v47 = vld [vmem:[#allocation8 + $0x558] ss:$12 sps:$4 sm:$0xff]   ;;  %v6296_v34 = vld [vmem:[#allocation8 + $0x540] ss:$12 sps:$4 sm:$0xff]  }
 0x1d1   :  { %v2209_v57 = vpop.f32.mrf.mxu1  ;;  %4551 = vmatprep.subr.bf16.mxu1 %v6262_v52  ;;  %v6295_v49 = vld [vmem:[#allocation8 + $0x3c4] ss:$12 sps:$4 sm:$0xff]   ;;  %v2447_v61 = vmax.f32 %v2169_v33, 0.0  ;;  %v6332_v39 = vld [vmem:[#allocation8 + $0x600] ss:$12 sps:$4 sm:$0xff]  }
 0x1d2   :  { %v2210_v62 = vadd.f32 %v2209_v57, %v430_v24  ;;  %v2254_v2 = vpop.f32.mrf.mxu0  ;;  %v2251_v52 = vadd.f32 %v6817_v55, %v2208_v45  ;;  %v6301_v57 = vld [vmem:[#allocation8 + $0x6ac] ss:$12 sps:$4 sm:$0xff]   ;;  %v6311_v55 = vld [vmem:[#allocation8 + $0x828] ss:$12 sps:$4 sm:$0xff]   ;;  %v6838_v45 = vld [vmem:[#allocation7 + $0x8] sm:$0xf] }
 0x1d3   :  { %v2211_v1 = vpop.f32.mrf.mxu1  ;;  %4509 = vmatpush2.bf16.msra.mxu0 %v6257_v56  ;;  %v6293_v56 = vld [vmem:[#allocation8 + $0x3c0] ss:$12 sps:$4 sm:$0xff]   ;;  %v6359_v33 = vld [vmem:[#allocation8 + $0x8e8] ss:$12 sps:$4 sm:$0xff]  }
 0x1d4   :  { %4552 = vmatpush2.bf16.msra.mxu1 %v6260_v59  ;;  %4510 = vmatprep.subr.bf16.mxu0 %v6265_v60  ;;  %v2253_v9 = vadd.f32 %v2252_v58, %v2210_v62  ;;  %v2256_v19 = vpop.f32.mrf.mxu0  ;;  %v2212_v42 = vadd.f32 %v2211_v1, %v426_v37  ;;  %v2437_v60 = vmax.f32 %v2251_v52, 0.0  ;;  %v6299_v62 = vld [vmem:[#allocation8 + $0x6a8] ss:$12 sps:$4 sm:$0xff]   ;;  %v6347_v37 = vld [vmem:[#allocation8 + $0x798] ss:$12 sps:$4 sm:$0xff]  }
 0x1d5   :  { %v2213_v7 = vpop.f32.mrf.mxu1  ;;  %4553 = vmatprep.subr.bf16.mxu1 %v6268_v63 }
 0x1d6   :  { %v2214_v10 = vadd.f32 %v2213_v7, %v430_v24  ;;  %v2438_v35 = vmax.f32 %v2253_v9, 0.0  ;;  %v2255_v16 = vadd.f32 %v2254_v2, %v2212_v42  ;;  %v2165_v24 = vadd.f32 %v6798_v53, %v2122_v44  ;;  %v6304_v53 = vld [vmem:[#allocation8 + $0x694] ss:$12 sps:$4 sm:$0xff]   ;;  %v6317_v7 = vld [vmem:[#allocation8 + $0x810] ss:$12 sps:$4 sm:$0xff]  }
 0x1d7   :  { %4511 = vmatpush2.bf16.msra.mxu0 %v6263_v3  ;;  %v6319_v2 = vld [vmem:[#allocation8 + $0x814] ss:$12 sps:$4 sm:$0xff]   ;;  %v6302_v3 = vld [vmem:[#allocation8 + $0x690] ss:$12 sps:$4 sm:$0xff]   ;;  %v6305_v9 = vld [vmem:[#allocation8 + $0x678] ss:$12 sps:$4 sm:$0xff]  }
 0x1d8   :  { %v2257_v20 = vadd.f32 %v2256_v19, %v2214_v10  ;;  %4554 = vmatpush2.bf16.msra.mxu1 %v6266_v5  ;;  %4512 = vmatprep.subr.bf16.mxu0 %v6271_v8  ;;  %v2449_v58 = vmax.f32 %v2255_v16, 0.0  ;;  %v2435_v59 = vmax.f32 %v2165_v24, 0.0  ;;  %v6307_v5 = vld [vmem:[#allocation8 + $0x67c] ss:$12 sps:$4 sm:$0xff]   ;;  %v6310_v10 = vld [vmem:[#allocation8 + $0x664] ss:$12 sps:$4 sm:$0xff]  }
 0x1d9   :  { %4555 = vmatprep.subr.bf16.mxu1 %v6274_v11  ;;  %v6325_v8 = vld [vmem:[#allocation8 + $0x7fc] ss:$12 sps:$4 sm:$0xff]   ;;  %v6323_v11 = vld [vmem:[#allocation8 + $0x7f8] ss:$12 sps:$4 sm:$0xff]  }
 0x1da   :  { %v2450_v27 = vmax.f32 %v2257_v20, 0.0  ;;  %v6830_v63 = vpack.c.bf16 %v2447_v61, %v2435_v59  ;;  %v6832_v1 = vpack.c.bf16 %v2449_v58, %v2437_v60  ;;  %v6316_v19 = vld [vmem:[#allocation8 + $0x64c] ss:$12 sps:$4 sm:$0xff]   ;;  %v6338_v44 = vld [vmem:[#allocation8 + $0x768] ss:$12 sps:$4 sm:$0xff]  }
 0x1db   :  { %4513 = vmatpush2.bf16.msra.mxu0 %v6269_v21  ;;  %v6329_v20 = vld [vmem:[#allocation8 + $0x7e0] ss:$12 sps:$4 sm:$0xff]   ;;  %v6344_v24 = vld [vmem:[#allocation8 + $0x750] ss:$12 sps:$4 sm:$0xff]   ;;  %v6350_v59 = vld [vmem:[#allocation8 + $0x738] ss:$12 sps:$4 sm:$0xff]  }
 0x1dc   :  { %v6821_v32 = vpack.c.bf16 %v2450_v27, %v2438_v35  ;;  %4556 = vmatpush2.bf16.msra.mxu1 %v6272_v23  ;;  %4514 = vmatprep.subr.bf16.mxu0 %v6277_v6  ;;  %v6337_v21 = vld [vmem:[#allocation8 + $0x7cc] ss:$12 sps:$4 sm:$0xff]   ;;  %v6314_v23 = vld [vmem:[#allocation8 + $0x648] ss:$12 sps:$4 sm:$0xff]   ;;  %v6365_v61 = vld [vmem:[#allocation8 + $0x8d0] ss:$12 sps:$4 sm:$0xff]  }
 0x1dd   :  { %4557 = vmatprep.subr.bf16.mxu1 %v6280_v29  ;;  %v6322_v6 = vld [vmem:[#allocation8 + $0x634] ss:$12 sps:$4 sm:$0xff]   ;;  %v6328_v29 = vld [vmem:[#allocation8 + $0x61c] ss:$12 sps:$4 sm:$0xff]   ;;  %v6361_v42 = vld [vmem:[#allocation8 + $0x8ec] ss:$12 sps:$4 sm:$0xff]  }
 0x1de   :  { %4565 = vmatprep.mubr.bf16.mxu1 %v6821_v32  ;;  %v6335_v35 = vld [vmem:[#allocation8 + $0x7c8] ss:$12 sps:$4 sm:$0xff]  }
 0x1df   :  { %4515 = vmatpush2.bf16.msra.mxu0 %v6275_v28  ;;  %v6343_v27 = vld [vmem:[#allocation8 + $0x7b4] ss:$12 sps:$4 sm:$0xff]   ;;  %v6320_v28 = vld [vmem:[#allocation8 + $0x630] ss:$12 sps:$4 sm:$0xff]  }
 0x1e0   :  { %4558 = vmatpush2.bf16.msra.mxu1 %v6278_v31  ;;  %4516 = vmatprep.subr.bf16.mxu0 %v6283_v26  ;;  %v6341_v31 = vld [vmem:[#allocation8 + $0x7b0] ss:$12 sps:$4 sm:$0xff]  }
 0x1e1   :  { %4559 = vmatprep.subr.bf16.mxu1 %v6286_v17  ;;  %v6349_v26 = vld [vmem:[#allocation8 + $0x79c] ss:$12 sps:$4 sm:$0xff]   ;;  %v6326_v17 = vld [vmem:[#allocation8 + $0x618] ss:$12 sps:$4 sm:$0xff]  }
 0x1e3   :  { %4517 = vmatpush2.bf16.msra.mxu0 %v6281_v38  ;;  %v6355_v38 = vld [vmem:[#allocation8 + $0x784] ss:$12 sps:$4 sm:$0xff]  }
 0x1e4   :  { %4560 = vmatpush2.bf16.msra.mxu1 %v6284_v40  ;;  %4518 = vmatprep.subr.bf16.mxu0 %v6289_v41  ;;  %v6340_v40 = vld [vmem:[#allocation8 + $0x76c] ss:$12 sps:$4 sm:$0xff]  }
 0x1e5   :  { %4561 = vmatprep.subr.bf16.mxu1 %v6292_v43  ;;  %v6353_v41 = vld [vmem:[#allocation8 + $0x780] ss:$12 sps:$4 sm:$0xff]  }
 0x1e7   :  { %4519 = vmatpush2.bf16.msra.mxu0 %v6287_v46  ;;  %v6346_v46 = vld [vmem:[#allocation8 + $0x754] ss:$12 sps:$4 sm:$0xff]  }
 0x1e8   :  { %4562 = vmatpush2.bf16.msra.mxu1 %v6290_v47  ;;  %4520 = vmatprep.subr.bf16.mxu0 %v6295_v49  ;;  %v438_v47 = vrot.slane %v6838_v45, %v6763_v54  ;;  %v6367_v49 = vld [vmem:[#allocation8 + $0x8d4] ss:$12 sps:$4 sm:$0xff]  }
 0x1e9   :  { %4563 = vmatprep.subr.bf16.mxu1 %v6298_v50 }
 0x1eb   :  { %4521 = vmatpush2.bf16.msra.mxu0 %v6293_v56  ;;  %v6352_v56 = vld [vmem:[#allocation8 + $0x73c] ss:$12 sps:$4 sm:$0xff]  }
 0x1ec   :  { %4564 = vmatpush2.bf16.msra.mxu1 %v6296_v34  ;;  %4576 = vmatprep.subr.bf16.mxu0 %v6301_v57  ;;  %v6373_v57 = vld [vmem:[#allocation8 + $0x8bc] ss:$12 sps:$4 sm:$0xff]  }
 0x1ed   :  { %4619 = vmatprep.subr.bf16.mxu1 %v6313_v4 }
 0x1ee   :  { %4523 = vmatmul.mubr.bf16.vlgmr.msra.gmra.mxu0 %v6830_v63 }
 0x1ef   :  { %4566 = vmatmul.mubr.bf16.vlgmr.msra.gmra.mxu1 %v6832_v1  ;;  %4577 = vmatpush1.bf16.msra.mxu0 %v6299_v62  ;;  %v6836_v43 = vpop.f32.mrf.mxu1  ;;  %v6358_v62 = vld [vmem:[#allocation8 + $0x724] ss:$12 sps:$4 sm:$0xff]  }
 0x1f0   :  { %4578 = vmatprep.subr.bf16.mxu0 %v6304_v53  ;;  %4620 = vmatpush1.bf16.msra.mxu1 %v6311_v55  ;;  %v6371_v53 = vld [vmem:[#allocation8 + $0x8b8] ss:$12 sps:$4 sm:$0xff]  }
 0x1f1   :  { %4621 = vmatprep.subr.bf16.mxu1 %v6319_v2  ;;  %v2338_v16 = vpop.f32.mrf.mxu1 }
 0x1f3   :  { %4579 = vmatpush1.bf16.msra.mxu0 %v6302_v3  ;;  %v2340_v58 = vpop.f32.mrf.mxu1  ;;  %v6379_v3 = vld [vmem:[#allocation8 + $0x8a4] ss:$12 sps:$4 sm:$0xff]  }
 0x1f4   :  { %4580 = vmatprep.subr.bf16.mxu0 %v6307_v5  ;;  %4622 = vmatpush1.bf16.msra.mxu1 %v6317_v7 }
 0x1f5   :  { %4623 = vmatprep.subr.bf16.mxu1 %v6325_v8  ;;  %v2342_v5 = vpop.f32.mrf.mxu1  ;;  %v6356_v8 = vld [vmem:[#allocation8 + $0x720] ss:$12 sps:$4 sm:$0xff]  }
 0x1f7   :  { %4581 = vmatpush1.bf16.msra.mxu0 %v6305_v9  ;;  %v6364_v9 = vld [vmem:[#allocation8 + $0x70c] ss:$12 sps:$4 sm:$0xff]  }
 0x1f8   :  { %4582 = vmatprep.subr.bf16.mxu0 %v6310_v10  ;;  %4624 = vmatpush1.bf16.msra.mxu1 %v6323_v11  ;;  %v6377_v10 = vld [vmem:[#allocation8 + $0x8a0] ss:$12 sps:$4 sm:$0xff]  }
 0x1f9   :  { %4625 = vmatprep.subr.bf16.mxu1 %v6331_v13 }
 0x1fb   :  { %4583 = vmatpush1.bf16.msra.mxu0 %v6308_v14  ;;  %v6385_v14 = vld [vmem:[#allocation8 + $0x88c] ss:$12 sps:$4 sm:$0xff]  }
 0x1fc   :  { %4584 = vmatprep.subr.bf16.mxu0 %v6316_v19  ;;  %4626 = vmatpush1.bf16.msra.mxu1 %v6329_v20  ;;  %v6362_v20 = vld [vmem:[#allocation8 + $0x708] ss:$12 sps:$4 sm:$0xff]  }
 0x1fd   :  { %4627 = vmatprep.subr.bf16.mxu1 %v6337_v21  ;;  %v6370_v21 = vld [vmem:[#allocation8 + $0x6f4] ss:$12 sps:$4 sm:$0xff]  }
 0x1ff   :  { %4585 = vmatpush1.bf16.msra.mxu0 %v6314_v23  ;;  %v6383_v23 = vld [vmem:[#allocation8 + $0x888] ss:$12 sps:$4 sm:$0xff]  }
 0x200   :  { %4586 = vmatprep.subr.bf16.mxu0 %v6322_v6  ;;  %4628 = vmatpush1.bf16.msra.mxu1 %v6335_v35  ;;  %v6390_v6 = vld [vmem:[#allocation8 + $0x874] ss:$12 sps:$4 sm:$0xff]   ;;  %v434_v35 = vrot.slane %v6838_v45, %v6750_v18 }
 0x201   :  { %4629 = vmatprep.subr.bf16.mxu1 %v6343_v27  ;;  %v6368_v27 = vld [vmem:[#allocation8 + $0x6f0] ss:$12 sps:$4 sm:$0xff]  }
 0x203   :  { %4587 = vmatpush1.bf16.msra.mxu0 %v6320_v28 }
 0x204   :  { %4588 = vmatprep.subr.bf16.mxu0 %v6328_v29  ;;  %4630 = vmatpush1.bf16.msra.mxu1 %v6341_v31  ;;  %v6376_v29 = vld [vmem:[#allocation8 + $0x6dc] ss:$12 sps:$4 sm:$0xff]  }
 0x205   :  { %4631 = vmatprep.subr.bf16.mxu1 %v6349_v26  ;;  %v6388_v31 = vld [vmem:[#allocation8 + $0x870] ss:$12 sps:$4 sm:$0xff]  }
 0x206   :  { %v6395_v26 = vld [vmem:[#allocation8 + $0x85c] ss:$12 sps:$4 sm:$0xff]  }
 0x207   :  { %4589 = vmatpush1.bf16.msra.mxu0 %v6326_v17 }
 0x208   :  { %4590 = vmatprep.subr.bf16.mxu0 %v6334_v36  ;;  %4632 = vmatpush1.bf16.msra.mxu1 %v6347_v37  ;;  %v6374_v36 = vld [vmem:[#allocation8 + $0x6d8] ss:$12 sps:$4 sm:$0xff]  }
 0x209   :  { %4633 = vmatprep.subr.bf16.mxu1 %v6355_v38  ;;  %v6382_v38 = vld [vmem:[#allocation8 + $0x6c4] ss:$12 sps:$4 sm:$0xff]  }
 0x20b   :  { %4591 = vmatpush1.bf16.msra.mxu0 %v6332_v39  ;;  %v6393_v39 = vld [vmem:[#allocation8 + $0x858] ss:$12 sps:$4 sm:$0xff]  }
 0x20c   :  { %4592 = vmatprep.subr.bf16.mxu0 %v6340_v40  ;;  %4634 = vmatpush1.bf16.msra.mxu1 %v6353_v41  ;;  %v6400_v40 = vld [vmem:[#allocation8 + $0x844] ss:$12 sps:$4 sm:$0xff]  }
 0x20d   :  { %4635 = vmatprep.subr.bf16.mxu1 %v6361_v42  ;;  %v6380_v42 = vld [vmem:[#allocation8 + $0x6c0] ss:$12 sps:$4 sm:$0xff]  }
 0x20e   :  { %v2293_v50 = vpop.f32.mrf.mxu0 }
 0x20f   :  { %4593 = vmatpush2.bf16.msra.mxu0 %v6338_v44  ;;  %v2294_v17 = vadd.f32 %v2293_v50, %v434_v35 }
 0x210   :  { %v2295_v52 = vpop.f32.mrf.mxu0  ;;  %4594 = vmatprep.subr.bf16.mxu0 %v6346_v46  ;;  %4636 = vmatpush2.bf16.msra.mxu1 %v6359_v33  ;;  %v6386_v46 = vld [vmem:[#allocation8 + $0x170] ss:$12 sps:$4 sm:$0xff]   ;;  %v6398_v33 = vld [vmem:[#allocation8 + $0x840] ss:$12 sps:$4 sm:$0xff]  }
 0x211   :  { %v2296_v34 = vadd.f32 %v2295_v52, %v438_v47  ;;  %4637 = vmatprep.subr.bf16.mxu1 %v6367_v49  ;;  %v2337_v41 = vadd.f32 %v6836_v43, %v2294_v17  ;;  %v446_v43 = vrot.slane %v6838_v45, %v413_v15  ;;  %v442_v52 = vrot.slane %v6838_v45, %v6789_v51  ;;  %v6412_v17 = vld [vmem:[#allocation8 + $0xe0] ss:$12 sps:$4 sm:$0xff]  }
 0x212   :  { %v2297_v4 = vpop.f32.mrf.mxu0 }
 0x213   :  { %4595 = vmatpush2.bf16.msra.mxu0 %v6344_v24  ;;  %v2339_v55 = vadd.f32 %v2338_v16, %v2296_v34  ;;  %v2298_v28 = vadd.f32 %v2297_v4, %v434_v35  ;;  %v2439_v49 = vmax.f32 %v2337_v41, 0.0  ;;  %v6387_v16 = vld [vmem:[#allocation8 + $0xb0] ss:$12 sps:$4 sm:$0xff]   ;;  %v6391_v24 = vld [vmem:[#allocation8 + $0x158] ss:$12 sps:$4 sm:$0xff]  }
 0x214   :  { %v2299_v60 = vpop.f32.mrf.mxu0  ;;  %4596 = vmatprep.subr.bf16.mxu0 %v6352_v56  ;;  %4638 = vmatpush2.bf16.msra.mxu1 %v6365_v61  ;;  %v6392_v34 = vld [vmem:[#allocation8 + $0x98] ss:$12 sps:$4 sm:$0xff]   ;;  %v6396_v4 = vld [vmem:[#allocation8 + $0x140] ss:$12 sps:$4 sm:$0xff]   ;;  %v6418_v41 = vld [vmem:[#allocation8 + $0x8] ss:$12 sps:$4 sm:$0xff]  }
 0x215   :  { %v2300_v2 = vadd.f32 %v2299_v60, %v438_v47  ;;  %4639 = vmatprep.subr.bf16.mxu1 %v6373_v57  ;;  %v2440_v11 = vmax.f32 %v2339_v55, 0.0  ;;  %v2341_v37 = vadd.f32 %v2340_v58, %v2298_v28  ;;  %v6403_v47 = vld [vmem:[#allocation8 + $0x2f0] ss:$12 sps:$4 sm:$0xff]   ;;  %v6401_v55 = vld [vmem:[#allocation8 + $0x128] ss:$12 sps:$4 sm:$0xff]  }
 0x216   :  { %v6408_v28 = vld [vmem:[#allocation8 + $0xf8] ss:$12 sps:$4 sm:$0xff]  }
 0x217   :  { %v2343_v7 = vadd.f32 %v2342_v5, %v2300_v2  ;;  %4597 = vmatpush2.bf16.msra.mxu0 %v6350_v59  ;;  %v2451_v44 = vmax.f32 %v2341_v37, 0.0  ;;  %v6414_v37 = vld [vmem:[#allocation8 + $0x20] ss:$12 sps:$4 sm:$0xff]  }
 0x218   :  { %4598 = vmatprep.subr.bf16.mxu0 %v6358_v62  ;;  %4640 = vmatpush2.bf16.msra.mxu1 %v6371_v53  ;;  %v6397_v53 = vld [vmem:[#allocation8 + $0x80] ss:$12 sps:$4 sm:$0xff]  }
 0x219   :  { %v2452_v13 = vmax.f32 %v2343_v7, 0.0  ;;  %4641 = vmatprep.subr.bf16.mxu1 %v6379_v3  ;;  %v6848_v50 = vpack.c.bf16 %v2451_v44, %v2439_v49  ;;  %v6420_v44 = vld [vmem:[#allocation8 + $0x1d0] ss:$12 sps:$4 sm:$0xff]   ;;  %v6424_v49 = vld [vmem:[#allocation8 + $0x1b8] ss:$12 sps:$4 sm:$0xff]  }
 0x21b   :  { %4599 = vmatpush2.bf16.msra.mxu0 %v6356_v8  ;;  %v6842_v19 = vpack.c.bf16 %v2452_v13, %v2440_v11  ;;  %v6404_v11 = vld [vmem:[#allocation8 + $0x110] ss:$12 sps:$4 sm:$0xff]  }
 0x21c   :  { %4600 = vmatprep.subr.bf16.mxu0 %v6364_v9  ;;  %4642 = vmatpush2.bf16.msra.mxu1 %v6377_v10  ;;  %v6402_v9 = vld [vmem:[#allocation8 + $0x68] ss:$12 sps:$4 sm:$0xff]  }
 0x21d   :  { %4608 = vmatprep.mubr.bf16.mxu0 %v6842_v19  ;;  %4643 = vmatprep.subr.bf16.mxu1 %v6385_v14 }
 0x21f   :  { %4601 = vmatpush2.bf16.msra.mxu0 %v6362_v20 }
 0x220   :  { %4602 = vmatprep.subr.bf16.mxu0 %v6370_v21  ;;  %4644 = vmatpush2.bf16.msra.mxu1 %v6383_v23  ;;  %v6405_v23 = vld [vmem:[#allocation8 + $0x230] ss:$12 sps:$4 sm:$0xff]  }
 0x221   :  { %4645 = vmatprep.subr.bf16.mxu1 %v6390_v6  ;;  %v6406_v6 = vld [vmem:[#allocation8 + $0x50] ss:$12 sps:$4 sm:$0xff]  }
 0x223   :  { %4603 = vmatpush2.bf16.msra.mxu0 %v6368_v27  ;;  %v6407_v27 = vld [vmem:[#allocation8 + $0x2d8] ss:$12 sps:$4 sm:$0xff]  }
 0x224   :  { %4604 = vmatprep.subr.bf16.mxu0 %v6376_v29  ;;  %4646 = vmatpush2.bf16.msra.mxu1 %v6388_v31  ;;  %v6409_v29 = vld [vmem:[#allocation8 + $0x218] ss:$12 sps:$4 sm:$0xff]  }
 0x225   :  { %4647 = vmatprep.subr.bf16.mxu1 %v6395_v26  ;;  %v6410_v31 = vld [vmem:[#allocation8 + $0x38] ss:$12 sps:$4 sm:$0xff]   ;;  %v6411_v26 = vld [vmem:[#allocation8 + $0x2c0] ss:$12 sps:$4 sm:$0xff]  }
 0x227   :  { %4605 = vmatpush2.bf16.msra.mxu0 %v6374_v36  ;;  %v6413_v36 = vld [vmem:[#allocation8 + $0x200] ss:$12 sps:$4 sm:$0xff]  }
 0x228   :  { %4606 = vmatprep.subr.bf16.mxu0 %v6382_v38  ;;  %4648 = vmatpush2.bf16.msra.mxu1 %v6393_v39  ;;  %v6415_v38 = vld [vmem:[#allocation8 + $0x2a8] ss:$12 sps:$4 sm:$0xff]  }
 0x229   :  { %4649 = vmatprep.subr.bf16.mxu1 %v6400_v40  ;;  %v6416_v39 = vld [vmem:[#allocation8 + $0xc8] ss:$12 sps:$4 sm:$0xff]  }
 0x22a   :  { %v6417_v40 = vld [vmem:[#allocation8 + $0x1e8] ss:$12 sps:$4 sm:$0xff]  }
 0x22b   :  { %4607 = vmatpush2.bf16.msra.mxu0 %v6380_v42  ;;  %v6419_v42 = vld [vmem:[#allocation8 + $0x290] ss:$12 sps:$4 sm:$0xff]  }
 0x22c   :  { %5525 = vmatprep.subr.bf16.mxu0 %v6386_v46  ;;  %4650 = vmatpush2.bf16.msra.mxu1 %v6398_v33  ;;  %v6422_v46 = vld [vmem:[#allocation8 + $0x3b0] ss:$12 sps:$4 sm:$0xff]   ;;  %v6423_v33 = vld [vmem:[#allocation8 + $0x278] ss:$12 sps:$4 sm:$0xff]  }
 0x22d   :  { %5547 = vmatprep.subr.bf16.mxu1 %v6403_v47  ;;  %v6425_v47 = vld [vmem:[#allocation8 + $0x458] ss:$12 sps:$4 sm:$0xff]  }
 0x22e   :  { %v2422_v61 = vpop.f32.mrf.mxu0  ;;  %4609 = vmatmul.mubr.bf16.vlgmr.msra.gmra.mxu0 %v6848_v50 }
 0x22f   :  { %v2379_v56 = vpop.f32.mrf.mxu1  ;;  %5526 = vmatpush3.bf16.msra.mxu0 %v6387_v16  ;;  %4694 = vmatprep.mubr.bf16.mxu0 %v6769_v22  ;;  %v6426_v16 = vld [vmem:[#allocation8 + $0x398] ss:$12 sps:$4 sm:$0xff]  }
 0x230   :  { %v2424_v58 = vpop.f32.mrf.mxu0  ;;  %5527 = vmatprep.subr.bf16.mxu0 %v6391_v24  ;;  %v2380_v12 = vadd.f32 %v2379_v56, %v442_v52  ;;  %v6427_v24 = vld [vmem:[#allocation8 + $0x260] ss:$12 sps:$4 sm:$0xff]  }
 0x231   :  { %v2381_v57 = vpop.f32.mrf.mxu1  ;;  %v6430_v56 = vld [vmem:[#allocation8 + $0x380] ss:$12 sps:$4 sm:$0xff]  }
 0x232   :  { %v2382_v59 = vadd.f32 %v2381_v57, %v446_v43  ;;  %v2426_v15 = vpop.f32.mrf.mxu0  ;;  %v2423_v7 = vadd.f32 %v2422_v61, %v2380_v12  ;;  %v6431_v61 = vld [vmem:[#allocation8 + $0x248] ss:$12 sps:$4 sm:$0xff]   ;;  %v6439_v12 = vld [vmem:[#allocation8 + $0x5d8] ss:$12 sps:$4 sm:$0xff]  }
 0x233   :  { %v2383_v60 = vpop.f32.mrf.mxu1  ;;  %5528 = vmatpush3.bf16.msra.mxu0 %v6392_v34  ;;  %v6433_v34 = vld [vmem:[#allocation8 + $0x428] ss:$12 sps:$4 sm:$0xff]  }
 0x234   :  { %v2384_v62 = vadd.f32 %v2383_v60, %v442_v52  ;;  %5529 = vmatprep.subr.bf16.mxu0 %v6396_v4  ;;  %v2425_v2 = vadd.f32 %v2424_v58, %v2382_v59  ;;  %v2428_v22 = vpop.f32.mrf.mxu0  ;;  %v2441_v20 = vmax.f32 %v2423_v7, 0.0  ;;  %v6428_v52 = vld [vmem:[#allocation8 + $0x1a0] ss:$12 sps:$4 sm:$0xff]   ;;  %v6434_v57 = vld [vmem:[#allocation8 + $0x368] ss:$12 sps:$4 sm:$0xff]  }
 0x235   :  { %v2385_v45 = vpop.f32.mrf.mxu1  ;;  %v6435_v58 = vld [vmem:[#allocation8 + $0x5f0] ss:$12 sps:$4 sm:$0xff]   ;;  %v6440_v60 = vld [vmem:[#allocation8 + $0x3f8] ss:$12 sps:$4 sm:$0xff]  }
 0x236   :  { %v2427_v3 = vadd.f32 %v2426_v15, %v2384_v62  ;;  %v2386_v5 = vadd.f32 %v2385_v45, %v446_v43  ;;  %v2442_v13 = vmax.f32 %v2425_v2, 0.0  ;;  %v6429_v43 = vld [vmem:[#allocation8 + $0x440] ss:$12 sps:$4 sm:$0xff]   ;;  %v6437_v4 = vld [vmem:[#allocation8 + $0x530] ss:$12 sps:$4 sm:$0xff]  }
 0x237   :  { %5530 = vmatpush3.bf16.msra.mxu0 %v6397_v53  ;;  %v6438_v59 = vld [vmem:[#allocation8 + $0x350] ss:$12 sps:$4 sm:$0xff]   ;;  %v6441_v15 = vld [vmem:[#allocation8 + $0x518] ss:$12 sps:$4 sm:$0xff]   ;;  %v6443_v53 = vld [vmem:[#allocation8 + $0x5c0] ss:$12 sps:$4 sm:$0xff]  }
 0x238   :  { %v2429_v8 = vadd.f32 %v2428_v22, %v2386_v5  ;;  %v2453_v10 = vmax.f32 %v2427_v3, 0.0  ;;  %5531 = vmatprep.subr.bf16.mxu0 %v6401_v55  ;;  %v6442_v62 = vld [vmem:[#allocation8 + $0x338] ss:$12 sps:$4 sm:$0xff]   ;;  %v6444_v45 = vld [vmem:[#allocation8 + $0x3e0] ss:$12 sps:$4 sm:$0xff]  }
 0x239   :  { %v6445_v55 = vld [vmem:[#allocation8 + $0x500] ss:$12 sps:$4 sm:$0xff]   ;;  %v6447_v3 = vld [vmem:[#allocation8 + $0x5a8] ss:$12 sps:$4 sm:$0xff]   ;;  %v6451_v7 = vld [vmem:[#allocation8 + $0x590] ss:$12 sps:$4 sm:$0xff]  }
 0x23a   :  { %v2454_v14 = vmax.f32 %v2429_v8, 0.0  ;;  %v6859_v35 = vpack.c.bf16 %v2453_v10, %v2441_v20  ;;  %v6446_v2 = vld [vmem:[#allocation8 + $0x320] ss:$12 sps:$4 sm:$0xff]   ;;  %v6448_v5 = vld [vmem:[#allocation8 + $0x3c8] ss:$12 sps:$4 sm:$0xff]  }
 0x23b   :  { %5532 = vmatpush3.bf16.msra.mxu0 %v6402_v9  ;;  %v6453_v22 = vld [vmem:[#allocation8 + $0x770] ss:$12 sps:$4 sm:$0xff]   ;;  %v6455_v10 = vld [vmem:[#allocation8 + $0x578] ss:$12 sps:$4 sm:$0xff]   ;;  %v6459_v20 = vld [vmem:[#allocation8 + $0x560] ss:$12 sps:$4 sm:$0xff]  }
 0x23c   :  { %v6857_v21 = vpack.c.bf16 %v2454_v14, %v2442_v13  ;;  %5533 = vmatprep.subr.bf16.mxu0 %v6404_v11  ;;  %v6452_v8 = vld [vmem:[#allocation8 + $0x4d0] ss:$12 sps:$4 sm:$0xff]   ;;  %v6457_v11 = vld [vmem:[#allocation8 + $0x758] ss:$12 sps:$4 sm:$0xff]  }
 0x23d   :  { %v6454_v9 = vld [vmem:[#allocation8 + $0x6b0] ss:$12 sps:$4 sm:$0xff]   ;;  %v6456_v13 = vld [vmem:[#allocation8 + $0x4b8] ss:$12 sps:$4 sm:$0xff]  }
 0x23e   :  { %4651 = vmatprep.mubr.bf16.mxu1 %v6857_v21  ;;  %v6458_v14 = vld [vmem:[#allocation8 + $0x698] ss:$12 sps:$4 sm:$0xff]  }
 0x23f   :  { %4652 = vmatmul.mubr.bf16.vlgmr.msra.gmra.mxu1 %v6859_v35  ;;  %5534 = vmatpush3.bf16.msra.mxu0 %v6406_v6  ;;  %v6460_v6 = vld [vmem:[#allocation8 + $0x4a0] ss:$12 sps:$4 sm:$0xff]  }
 0x240   :  { %5548 = vmatpush3.bf16.msra.mxu1 %v6405_v23  ;;  %4735 = vmatprep.mubr.bf16.mxu1 %v6785_v48  ;;  %v6421_v48 = vld [vmem:[#allocation8 + $0x470] ss:$12 sps:$4 sm:$0xff]   ;;  %v6461_v23 = vld [vmem:[#allocation8 + $0x740] ss:$12 sps:$4 sm:$0xff]  }
 0x241   :  { %5549 = vmatprep.subr.bf16.mxu1 %v6407_v27  ;;  %5535 = vmatprep.subr.bf16.mxu0 %v6408_v28  ;;  %v6462_v27 = vld [vmem:[#allocation8 + $0x680] ss:$12 sps:$4 sm:$0xff]   ;;  %v6463_v28 = vld [vmem:[#allocation8 + $0x548] ss:$12 sps:$4 sm:$0xff]  }
 0x243   :  { %5536 = vmatpush3.bf16.msra.mxu0 %v6410_v31  ;;  %v6466_v31 = vld [vmem:[#allocation8 + $0x668] ss:$12 sps:$4 sm:$0xff]  }
 0x244   :  { %5550 = vmatpush3.bf16.msra.mxu1 %v6409_v29  ;;  %5537 = vmatprep.subr.bf16.mxu0 %v6412_v17  ;;  %v6465_v29 = vld [vmem:[#allocation8 + $0x728] ss:$12 sps:$4 sm:$0xff]   ;;  %v6469_v17 = vld [vmem:[#allocation8 + $0x830] ss:$12 sps:$4 sm:$0xff]  }
 0x245   :  { %5551 = vmatprep.subr.bf16.mxu1 %v6411_v26  ;;  %v6467_v26 = vld [vmem:[#allocation8 + $0x8f0] ss:$12 sps:$4 sm:$0xff]  }
 0x247   :  { %5538 = vmatpush3.bf16.msra.mxu0 %v6414_v37  ;;  %v6471_v37 = vld [vmem:[#allocation8 + $0x8d8] ss:$12 sps:$4 sm:$0xff]  }
 0x248   :  { %5552 = vmatpush3.bf16.msra.mxu1 %v6413_v36  ;;  %5539 = vmatprep.subr.bf16.mxu0 %v6416_v39  ;;  %v6470_v36 = vld [vmem:[#allocation8 + $0x650] ss:$12 sps:$4 sm:$0xff]   ;;  %v6473_v39 = vld [vmem:[#allocation8 + $0x818] ss:$12 sps:$4 sm:$0xff]  }
 0x249   :  { %5553 = vmatprep.subr.bf16.mxu1 %v6415_v38  ;;  %v6472_v38 = vld [vmem:[#allocation8 + $0x6f8] ss:$12 sps:$4 sm:$0xff]  }
 0x24b   :  { %5540 = vmatpush3.bf16.msra.mxu0 %v6418_v41  ;;  %v6475_v41 = vld [vmem:[#allocation8 + $0x8c0] ss:$12 sps:$4 sm:$0xff]  }
 0x24c   :  { %5554 = vmatpush3.bf16.msra.mxu1 %v6417_v40  ;;  %5569 = vmatprep.subr.bf16.mxu0 %v6421_v48  ;;  %v6474_v40 = vld [vmem:[#allocation8 + $0x638] ss:$12 sps:$4 sm:$0xff]   ;;  %v6477_v48 = vld [vmem:[#allocation8 + $0x800] ss:$12 sps:$4 sm:$0xff]  }
 0x24d   :  { %5555 = vmatprep.subr.bf16.mxu1 %v6419_v42  ;;  %v6476_v42 = vld [vmem:[#allocation8 + $0x6e0] ss:$12 sps:$4 sm:$0xff]  }
 0x24e   :  { %4695 = vmatmul.mubr.bf16.vlgmr.msra.gmra.mxu0 %v6760_v0  ;;  %v6432_v0 = vld [vmem:[#allocation8 + $0x188] ss:$12 sps:$4 sm:$0xff]  }
 0x24f   :  { %5570 = vmatpush3.bf16.msra.mxu0 %v6422_v46  ;;  %4776 = vmatprep.mubr.bf16.mxu0 %v6811_v30  ;;  %v6436_v30 = vld [vmem:[#allocation8 + $0x410] ss:$12 sps:$4 sm:$0xff]   ;;  %v6479_v46 = vld [vmem:[#allocation8 + $0x8a8] ss:$12 sps:$4 sm:$0xff]  }
 0x250   :  { %5556 = vmatpush3.bf16.msra.mxu1 %v6420_v44  ;;  %5571 = vmatprep.subr.bf16.mxu0 %v6425_v47  ;;  %v6478_v44 = vld [vmem:[#allocation8 + $0x620] ss:$12 sps:$4 sm:$0xff]   ;;  %v6483_v47 = vld [vmem:[#allocation8 + $0x890] ss:$12 sps:$4 sm:$0xff]  }
 0x251   :  { %5557 = vmatprep.subr.bf16.mxu1 %v6423_v33  ;;  %v6480_v33 = vld [vmem:[#allocation8 + $0x6c8] ss:$12 sps:$4 sm:$0xff]  }
 0x253   :  { %5572 = vmatpush3.bf16.msra.mxu0 %v6426_v16  ;;  %v6485_v16 = vld [vmem:[#allocation8 + $0x878] ss:$12 sps:$4 sm:$0xff]  }
 0x254   :  { %5558 = vmatpush3.bf16.msra.mxu1 %v6424_v49  ;;  %5573 = vmatprep.subr.bf16.mxu0 %v6429_v43  ;;  %v6484_v49 = vld [vmem:[#allocation8 + $0x7d0] ss:$12 sps:$4 sm:$0xff]   ;;  %v6487_v43 = vld [vmem:[#allocation8 + $0x860] ss:$12 sps:$4 sm:$0xff]  }
 0x255   :  { %5559 = vmatprep.subr.bf16.mxu1 %v6427_v24  ;;  %v6486_v24 = vld [vmem:[#allocation8 + $0x7b8] ss:$12 sps:$4 sm:$0xff]  }
 0x257   :  { %5574 = vmatpush3.bf16.msra.mxu0 %v6430_v56  ;;  %v6489_v56 = vld [vmem:[#allocation8 + $0x848] ss:$12 sps:$4 sm:$0xff]  }
 0x258   :  { %5560 = vmatpush3.bf16.msra.mxu1 %v6428_v52  ;;  %5575 = vmatprep.subr.bf16.mxu0 %v6433_v34  ;;  %v6488_v52 = vld [vmem:[#allocation8 + $0x7a0] ss:$12 sps:$4 sm:$0xff]  }
 0x259   :  { %5561 = vmatprep.subr.bf16.mxu1 %v6431_v61  ;;  %v6490_v61 = vld [vmem:[#allocation8 + $0x788] ss:$12 sps:$4 sm:$0xff]  }
 0x25b   :  { %5576 = vmatpush3.bf16.msra.mxu0 %v6434_v57 }
 0x25c   :  { %5562 = vmatpush3.bf16.msra.mxu1 %v6432_v0  ;;  %5577 = vmatprep.subr.bf16.mxu0 %v6436_v30 }
 0x25d   :  { %5591 = vmatprep.subr.bf16.mxu1 %v6435_v58 }
 0x25f   :  { %4736 = vmatmul.mubr.bf16.vlgmr.msra.gmra.mxu1 %v6800_v25  ;;  %5578 = vmatpush3.bf16.msra.mxu0 %v6438_v59  ;;  %v6449_v25 = vld [vmem:[#allocation8 + $0x4e8] ss:$12 sps:$4 sm:$0xff]   ;;  %v6874_v59 = vld [vmem:[#allocation10] sm:$0x7] }
 0x260   :  { %5592 = vmatpush3.bf16.msra.mxu1 %v6437_v4  ;;  %4817 = vmatprep.mubr.bf16.mxu1 %v6821_v32  ;;  %v6450_v32 = vld [vmem:[#allocation8 + $0x308] ss:$12 sps:$4 sm:$0xff]  }
 0x261   :  { %5593 = vmatprep.subr.bf16.mxu1 %v6439_v12  ;;  %5579 = vmatprep.subr.bf16.mxu0 %v6440_v60 }
 0x263   :  { %5580 = vmatpush3.bf16.msra.mxu0 %v6442_v62 }
 0x264   :  { %5594 = vmatpush3.bf16.msra.mxu1 %v6441_v15  ;;  %5581 = vmatprep.subr.bf16.mxu0 %v6444_v45  ;;  %v2856_v15 = vrot.slane %v6874_v59, %v6750_v18  ;;  %v2860_v45 = vrot.slane %v6874_v59, %v6763_v54 }
 0x265   :  { %5595 = vmatprep.subr.bf16.mxu1 %v6443_v53 }
 0x267   :  { %5582 = vmatpush3.bf16.msra.mxu0 %v6446_v2 }
 0x268   :  { %5596 = vmatpush3.bf16.msra.mxu1 %v6445_v55  ;;  %5583 = vmatprep.subr.bf16.mxu0 %v6448_v5 }
 0x269   :  { %5597 = vmatprep.subr.bf16.mxu1 %v6447_v3 }
 0x26b   :  { %5584 = vmatpush3.bf16.msra.mxu0 %v6450_v32 }
 0x26c   :  { %5598 = vmatpush3.bf16.msra.mxu1 %v6449_v25  ;;  %5613 = vmatprep.subr.bf16.mxu0 %v6453_v22 }
 0x26d   :  { %5599 = vmatprep.subr.bf16.mxu1 %v6451_v7 }
 0x26e   :  { %4777 = vmatmul.mubr.bf16.vlgmr.msra.gmra.mxu0 %v6830_v63  ;;  %v6464_v63 = vld [vmem:[#allocation8 + $0x488] ss:$12 sps:$4 sm:$0xff]   ;;  %v4438_v34 = vpop.f32.mrf.mxu0 }
 0x26f   :  { %5614 = vmatpush3.bf16.msra.mxu0 %v6454_v9  ;;  %4858 = vmatprep.mubr.bf16.mxu0 %v6842_v19  ;;  %v6468_v19 = vld [vmem:[#allocation8 + $0x710] ss:$12 sps:$4 sm:$0xff]   ;;  %v4481_v58 = vpop.f32.mrf.mxu1  ;;  %v4439_v55 = vadd.f32 %v4438_v34, %v2856_v15 }
 0x270   :  { %5600 = vmatpush3.bf16.msra.mxu1 %v6452_v8  ;;  %5615 = vmatprep.subr.bf16.mxu0 %v6457_v11  ;;  %v4440_v0 = vpop.f32.mrf.mxu0 }
 0x271   :  { %5601 = vmatprep.subr.bf16.mxu1 %v6455_v10  ;;  %v4441_v3 = vadd.f32 %v4440_v0, %v2860_v45  ;;  %v4482_v32 = vadd.f32 %v4481_v58, %v4439_v55 }
 0x272   :  { %v4442_v57 = vpop.f32.mrf.mxu0 }
 0x273   :  { %5616 = vmatpush3.bf16.msra.mxu0 %v6458_v14  ;;  %v4443_v7 = vadd.f32 %v4442_v57, %v2856_v15 }
 0x274   :  { %5602 = vmatpush3.bf16.msra.mxu1 %v6456_v13  ;;  %5617 = vmatprep.subr.bf16.mxu0 %v6461_v23  ;;  %v4444_v30 = vpop.f32.mrf.mxu0 }
 0x275   :  { %5603 = vmatprep.subr.bf16.mxu1 %v6459_v20  ;;  %v4445_v8 = vadd.f32 %v4444_v30, %v2860_v45 }
 0x277   :  { %5618 = vmatpush3.bf16.msra.mxu0 %v6462_v27 }
 0x278   :  { %5604 = vmatpush3.bf16.msra.mxu1 %v6460_v6  ;;  %5619 = vmatprep.subr.bf16.mxu0 %v6465_v29 }
 0x279   :  { %5605 = vmatprep.subr.bf16.mxu1 %v6463_v28 }
 0x27b   :  { %5620 = vmatpush3.bf16.msra.mxu0 %v6466_v31  ;;  %v4908_v31 = vld [vmem:[#allocation11] sm:$0xff] }
 0x27c   :  { %5606 = vmatpush3.bf16.msra.mxu1 %v6464_v63  ;;  %5621 = vmatprep.subr.bf16.mxu0 %v6468_v19 }
 0x27d   :  { %5635 = vmatprep.subr.bf16.mxu1 %v6467_v26 }
 0x27f   :  { %4818 = vmatmul.mubr.bf16.vlgmr.msra.gmra.mxu1 %v6832_v1  ;;  %5622 = vmatpush3.bf16.msra.mxu0 %v6470_v36  ;;  %v6481_v1 = vld [vmem:[#allocation8 + $0x7e8] ss:$12 sps:$4 sm:$0xff]  }
 0x280   :  { %5636 = vmatpush3.bf16.msra.mxu1 %v6469_v17  ;;  %4899 = vmatprep.mubr.bf16.mxu1 %v6857_v21  ;;  %v6482_v21 = vld [vmem:[#allocation8 + $0x608] ss:$12 sps:$4 sm:$0xff]  }
 0x281   :  { %5637 = vmatprep.subr.bf16.mxu1 %v6471_v37  ;;  %5623 = vmatprep.subr.bf16.mxu0 %v6472_v38  ;;  %v4909_v38 = vld [vmem:[#allocation11 + $0x8] sm:$0xff] }
 0x283   :  { %5624 = vmatpush3.bf16.msra.mxu0 %v6474_v40 }
 0x284   :  { %5638 = vmatpush3.bf16.msra.mxu1 %v6473_v39  ;;  %5625 = vmatprep.subr.bf16.mxu0 %v6476_v42 }
 0x285   :  { %5639 = vmatprep.subr.bf16.mxu1 %v6475_v41 }
 0x287   :  { %5626 = vmatpush3.bf16.msra.mxu0 %v6478_v44  ;;  %v4911_v44 = vld [vmem:[#allocation11 + $0x18] sm:$0xff] }
 0x288   :  { %5640 = vmatpush3.bf16.msra.mxu1 %v6477_v48  ;;  %5627 = vmatprep.subr.bf16.mxu0 %v6480_v33 }
 0x289   :  { %5641 = vmatprep.subr.bf16.mxu1 %v6479_v46 }
 0x28b   :  { %5628 = vmatpush3.bf16.msra.mxu0 %v6482_v21 }
 0x28c   :  { %5642 = vmatpush3.bf16.msra.mxu1 %v6481_v1 }
 0x28d   :  { %5643 = vmatprep.subr.bf16.mxu1 %v6483_v47  ;;  %v4912_v47 = vld [vmem:[#allocation11 + $0x20] sm:$0xff] }
 0x28e   :  { %4859 = vmatmul.mubr.bf16.vlgmr.msra.gmra.mxu0 %v6848_v50  ;;  %v4483_v50 = vpop.f32.mrf.mxu1 }
 0x28f   :  { %v4484_v22 = vadd.f32 %v4483_v50, %v4441_v3 }
 0x290   :  { %5644 = vmatpush3.bf16.msra.mxu1 %v6484_v49  ;;  %v4485_v12 = vpop.f32.mrf.mxu1 }
 0x291   :  { %5645 = vmatprep.subr.bf16.mxu1 %v6485_v16  ;;  %v4486_v13 = vadd.f32 %v4485_v12, %v4443_v7 }
 0x292   :  { %v4487_v62 = vpop.f32.mrf.mxu1 }
 0x293   :  { %v4488_v14 = vadd.f32 %v4487_v62, %v4445_v8 }
 0x294   :  { %5646 = vmatpush3.bf16.msra.mxu1 %v6486_v24 }
 0x295   :  { %5647 = vmatprep.subr.bf16.mxu1 %v6487_v43 }
 0x298   :  { %5648 = vmatpush3.bf16.msra.mxu1 %v6488_v52 }
 0x299   :  { %5649 = vmatprep.subr.bf16.mxu1 %v6489_v56 }
 0x29c   :  { %5650 = vmatpush3.bf16.msra.mxu1 %v6490_v61 }
 0x29f   :  { %4900 = vmatmul.mubr.bf16.vlgmr.msra.gmra.mxu1 %v6859_v35 }
 0x2ae   :  { %v4524_v4 = vpop.f32.mrf.mxu0 }
 0x2af   :  { %v4567_v35 = vpop.f32.mrf.mxu1  ;;  %v4525_v9 = vadd.f32 %v4524_v4, %v4482_v32 }
 0x2b0   :  { %v4526_v60 = vpop.f32.mrf.mxu0 }
 0x2b1   :  { %v4569_v5 = vpop.f32.mrf.mxu1  ;;  %v4527_v18 = vadd.f32 %v4526_v60, %v4484_v22  ;;  %v4568_v20 = vadd.f32 %v4567_v35, %v4525_v9 }
 0x2b2   :  { %v4528_v53 = vpop.f32.mrf.mxu0 }
 0x2b3   :  { %v4571_v10 = vpop.f32.mrf.mxu1  ;;  %v4529_v23 = vadd.f32 %v4528_v53, %v4486_v13  ;;  %v4570_v27 = vadd.f32 %v4569_v5, %v4527_v18  ;;  %v2864_v53 = vrot.slane %v6874_v59, %v6789_v51 }
 0x2b4   :  { %v4530_v2 = vpop.f32.mrf.mxu0 }
 0x2b5   :  { %v4573_v6 = vpop.f32.mrf.mxu1  ;;  %v4531_v28 = vadd.f32 %v4530_v2, %v4488_v14  ;;  %v4572_v26 = vadd.f32 %v4571_v10, %v4529_v23 }
 0x2b7   :  { %v4574_v39 = vadd.f32 %v4573_v6, %v4531_v28 }
 0x2ee   :  { %v4610_v25 = vpop.f32.mrf.mxu0 }
 0x2ef   :  { %v4611_v29 = vadd.f32 %v4610_v25, %v4568_v20 }
 0x2f0   :  { %v4612_v11 = vpop.f32.mrf.mxu0 }
 0x2f1   :  { %v4613_v19 = vadd.f32 %v4612_v11, %v4570_v27 }
 0x2f2   :  { %v4614_v54 = vpop.f32.mrf.mxu0 }
 0x2f3   :  { %v4615_v40 = vadd.f32 %v4614_v54, %v4572_v26 }
 0x2f4   :  { %v4616_v36 = vpop.f32.mrf.mxu0 }
 0x2f5   :  { %v4617_v46 = vadd.f32 %v4616_v36, %v4574_v39  ;;  %v4913_v39 = vld [vmem:[#allocation11 + $0x28] sm:$0xff] }
 0x2ff   :  { %v4653_v63 = vpop.f32.mrf.mxu1 }
 0x300   :  { %v4654_v17 = vadd.f32 %v4653_v63, %v4611_v29  ;;  %v4910_v63 = vld [vmem:[#allocation11 + $0x10] sm:$0xff] }
 0x301   :  { %v4655_v37 = vpop.f32.mrf.mxu1 }
 0x302   :  { %v4914_v41 = vmul.f32 %v4908_v31, %v4654_v17  ;;  %v4656_v42 = vadd.f32 %v4655_v37, %v4613_v19 }
 0x303   :  { %v4657_v48 = vpop.f32.mrf.mxu1 }
 0x304   :  { %4920 = vst [vmem:[#allocation13] sm:$0xff] %v4914_v41  ;;  %v4915_v33 = vmul.f32 %v4909_v38, %v4656_v42  ;;  %v4658_v1 = vadd.f32 %v4657_v48, %v4615_v40 }
 0x305   :  { %v4659_v21 = vpop.f32.mrf.mxu1 }
 0x306   :  { %4921 = vst [vmem:[#allocation13 + $0x8] sm:$0xff] %v4915_v33  ;;  %v4917_v49 = vmul.f32 %v4911_v44, %v4658_v1  ;;  %v4660_v16 = vadd.f32 %v4659_v21, %v4617_v46 }
 0x308   :  { %4923 = vst [vmem:[#allocation13 + $0x18] sm:$0xff] %v4917_v49  ;;  %v4918_v24 = vmul.f32 %v4912_v47, %v4660_v16 }
 0x30a   :  { %4924 = vst [vmem:[#allocation13 + $0x20] sm:$0xff] %v4918_v24 }
 0x30e   :  { %v5541_v43 = vpop.f32.mrf.mxu0 }
 0x310   :  { %v5542_v52 = vpop.f32.mrf.mxu0 }
 0x311   :  { %v5543_v45 = vadd.f32 %v5542_v52, %v5541_v43 }
 0x312   :  { %v5544_v56 = vpop.f32.mrf.mxu0 }
 0x313   :  { %v4697_v3 = vadd.f32 %v5543_v45, %v2864_v53 }
 0x314   :  { %v5545_v61 = vpop.f32.mrf.mxu0 }
 0x315   :  { %v5546_v5 = vadd.f32 %v5545_v61, %v5544_v56 }
 0x317   :  { %v4700_v10 = vadd.f32 %v5546_v5, %v2864_v53 }
 0x31f   :  { %v5563_v34 = vpop.f32.mrf.mxu1 }
 0x321   :  { %v5564_v57 = vpop.f32.mrf.mxu1 }
 0x322   :  { %v5565_v55 = vadd.f32 %v5564_v57, %v5563_v34 }
 0x323   :  { %v5566_v30 = vpop.f32.mrf.mxu1 }
 0x324   :  { %v4738_v7 = vadd.f32 %v5565_v55, %v4697_v3 }
 0x325   :  { %v5567_v4 = vpop.f32.mrf.mxu1 }
 0x326   :  { %v5568_v22 = vadd.f32 %v5567_v4, %v5566_v30 }
 0x328   :  { %v4741_v23 = vadd.f32 %v5568_v22, %v4700_v10 }
 0x32e   :  { %v5585_v0 = vpop.f32.mrf.mxu0 }
 0x330   :  { %v5586_v58 = vpop.f32.mrf.mxu0 }
 0x331   :  { %v5587_v25 = vadd.f32 %v5586_v58, %v5585_v0 }
 0x332   :  { %v5588_v50 = vpop.f32.mrf.mxu0 }
 0x333   :  { %v4779_v11 = vadd.f32 %v5587_v25, %v4738_v7 }
 0x334   :  { %v5589_v12 = vpop.f32.mrf.mxu0 }
 0x335   :  { %v5590_v13 = vadd.f32 %v5589_v12, %v5588_v50 }
 0x337   :  { %v4782_v54 = vadd.f32 %v5590_v13, %v4741_v23 }
 0x33f   :  { %v5607_v60 = vpop.f32.mrf.mxu1 }
 0x341   :  { %v5608_v62 = vpop.f32.mrf.mxu1 }
 0x342   :  { %v5609_v8 = vadd.f32 %v5608_v62, %v5607_v60 }
 0x343   :  { %v5610_v2 = vpop.f32.mrf.mxu1 }
 0x344   :  { %v4820_v51 = vadd.f32 %v5609_v8, %v4779_v11 }
 0x345   :  { %v5611_v9 = vpop.f32.mrf.mxu1 }
 0x346   :  { %v5612_v59 = vadd.f32 %v5611_v9, %v5610_v2 }
 0x348   :  { %v4823_v26 = vadd.f32 %v5612_v59, %v4782_v54 }
 0x34e   :  { %v5629_v15 = vpop.f32.mrf.mxu0 }
 0x350   :  { %v5630_v35 = vpop.f32.mrf.mxu0 }
 0x351   :  { %v5631_v18 = vadd.f32 %v5630_v35, %v5629_v15 }
 0x352   :  { %v5632_v32 = vpop.f32.mrf.mxu0 }
 0x353   :  { %v4861_v27 = vadd.f32 %v5631_v18, %v4820_v51 }
 0x354   :  { %v5633_v14 = vpop.f32.mrf.mxu0 }
 0x355   :  { %v5634_v28 = vadd.f32 %v5633_v14, %v5632_v32 }
 0x357   :  { %v4864_v36 = vadd.f32 %v5634_v28, %v4823_v26 }
 0x35f   :  { %v5651_v20 = vpop.f32.mrf.mxu1 }
 0x361   :  { %v5652_v6 = vpop.f32.mrf.mxu1 }
 0x362   :  { %v5653_v29 = vadd.f32 %v5652_v6, %v5651_v20 }
 0x363   :  { %v5654_v31 = vpop.f32.mrf.mxu1 }
 0x364   :  { %v4902_v19 = vadd.f32 %v5653_v29, %v4861_v27 }
 0x365   :  { %v5655_v17 = vpop.f32.mrf.mxu1 }
 0x366   :  { %v4916_v37 = vmul.f32 %v4910_v63, %v4902_v19  ;;  %v5656_v38 = vadd.f32 %v5655_v17, %v5654_v31 }
 0x368   :  { %4922 = vst [vmem:[#allocation13 + $0x10] sm:$0xff] %v4916_v37  ;;  %v4905_v40 = vadd.f32 %v5656_v38, %v4864_v36 }
 0x36a   :  { %v4919_v41 = vmul.f32 %v4913_v39, %v4905_v40 }
 0x36c   :  { %4925 = vst [vmem:[#allocation13 + $0x28] sm:$0xff] %v4919_v41 }
 0x36d   :  { %6626 = shalt.err (!%p6623_p6)
}
 0x36e   :  { %4937 = dma.vmem_to_hbm [thread:$0]  %s4932_s5, 768, %s6894_s6, [#allocation4], %s6655_s2, %s6655_s2, %s6656_s27  }
 0x36f   :  { %6643 = dma.done.wait [#allocation4], 768  }
 0x370   :  { %6644 = vsyncadd [#allocation4], 4294966528 }
 0x371   :  { %4941 = vsyncpa [#allocation3], 1 }
 0x372   :  { %4942 = vsyncpa [#allocation6], 1 }
 0x373   :  { %4943 = vsyncpa [#allocation9], 1 }
 0x374   :  { %4944 = vsyncpa [#allocation12], 1 }
 0x375   :  { %4945 = vsyncpa [#allocation4], 1 }

</bundles_post_ra>
